<compile_context>
chip_gen: v6e
topology: v6e:2x2x1
jax: 0.10.0
libtpu: 0.0.40
codegen_flags: <defaults>
</compile_context>

<pallas_src>
import math
from dataclasses import dataclass
from functools import partial

import jax
import jax.numpy as jnp
from jax import lax
from jax.experimental import pallas as pl
from jax.experimental.pallas import tpu as pltpu

EPS = float(jnp.finfo(jnp.float32).eps)     # nn.RMSNorm(eps=None) -> finfo(float32).eps
F32 = jnp.float32
BF = jnp.bfloat16
DN = (((1,), (1,)), ((), ()))               # y = x @ W.T   (W kept in PyTorch (out, in) layout)
DNT = (((1,), (0,)), ((), ()))              # y = p @ v


@dataclass
class Config:
    hidden_dim: int = 32
    num_heads: int = 2
    q_lora_rank: int = 16
    kv_lora_rank: int = 16
    qk_nope_head_dim: int = 16
    qk_rope_head_dim: int = 8
    v_head_dim: int = 16
    max_batch_size: int = 2
    max_seq_len: int = 8
    num_experts: int = 4
    topk: int = 2
    router_scale: float = 1.0
    moe_inter_dim: int = 32
    input_dim: int = 32


def _rms(x, w):
    xf = x.astype(F32)
    ms = jnp.mean(xf * xf, axis=-1, keepdims=True)
    return xf * lax.rsqrt(ms + EPS) * w


# ----------------------------- the fused Pallas kernel -----------------------------

def _mtp_block_kernel(hprev_ref, emb_ref, cosq_ref, sinq_ref,
                      vecs_ref, wpa_ref, wpb_ref,
                      wdown_ref, qnw_ref, wqup_ref, kvnw_ref, wkvup_ref,
                      wout_ref, gatew_ref, gateb_ref,
                      w13_ref, b13_ref, w2_ref, b2_ref,
                      o_ref, *,
                      nh, nope, rope, vd, rq, n_exp, topk, inter,
                      scale, router_scale):
    S, D = hprev_ref.shape
    vecs = vecs_ref[...]                           # (6, D) stacked D-wide vectors
    rms1_w, rms2_w = vecs[0:1], vecs[1:2]
    attn_w, ffn_w = vecs[2:3], vecs[3:4]
    proj_b, out_b = vecs[4:5], vecs[5:6]

    # ---- proj(concat(rms1(h_prev), rms2(embed))) == rms1(h)@Wa.T + rms2(e)@Wb.T + b ----
    h1 = _rms(hprev_ref[...], rms1_w).astype(BF)
    h2 = _rms(emb_ref[...], rms2_w).astype(BF)
    h_prime = (lax.dot_general(h1, wpa_ref[...], DN, preferred_element_type=F32)
               + lax.dot_general(h2, wpb_ref[...], DN, preferred_element_type=F32)
               + proj_b)

    # ---- MLA projections (attn_norm fused; merged down / up matmuls, RoPE folded into weights) ----
    xb = _rms(h_prime, attn_w).astype(BF)
    down = lax.dot_general(xb, wdown_ref[...], DN, preferred_element_type=F32)
    ql = down[:, :rq]
    k_rope = down[:, rq:rq + rope]
    k_rope_rot = down[:, rq + rope:rq + 2 * rope]          # == pair-rotated k_rope (exact, folded)
    kv_c = down[:, rq + 2 * rope:]

    qlo = _rms(ql, qnw_ref[...]).astype(BF)
    qcat = lax.dot_general(qlo, wqup_ref[...], DN, preferred_element_type=F32)
    q_nope = qcat[:, :nh * nope]
    q_rope = qcat[:, nh * nope:nh * (nope + rope)]
    q_rope_rot = qcat[:, nh * (nope + rope):]              # == pair-rotated q_rope (exact, folded)

    cos_q = cosq_ref[...]                                  # (S, nh*rope), interleaved-duplicated
    sin_q = sinq_ref[...]
    q_rot = q_rope * cos_q + q_rope_rot * sin_q            # RoPE: two FMAs, no permute / rot-matmul
    k_rot = k_rope * cos_q[:, :rope] + k_rope_rot * sin_q[:, :rope]

    kvn = _rms(kv_c, kvnw_ref[...]).astype(BF)
    kvcat = lax.dot_general(kvn, wkvup_ref[...], DN, preferred_element_type=F32)
    k_nope = kvcat[:, :nh * nope]
    v_all = kvcat[:, nh * nope:]

    # ---- all-heads causal attention + fused out_proj (S is small: full (S,S) tile in VMEM) ----
    qi = lax.broadcasted_iota(jnp.int32, (S, S), 0)
    ki = lax.broadcasted_iota(jnp.int32, (S, S), 1)
    causal = ki <= qi                                      # SDPA is_causal=True (start_pos=0)
    k_rot_b = k_rot.astype(BF)                             # rope-k shared across heads
    wout = wout_ref[...]
    acc = jnp.zeros((S, D), F32)
    for h in range(nh):
        qh_n = q_nope[:, h * nope:(h + 1) * nope].astype(BF)
        qh_r = q_rot[:, h * rope:(h + 1) * rope].astype(BF)
        kh_n = k_nope[:, h * nope:(h + 1) * nope].astype(BF)
        vh = v_all[:, h * vd:(h + 1) * vd].astype(BF)
        s = (lax.dot_general(qh_n, kh_n, DN, preferred_element_type=F32)
             + lax.dot_general(qh_r, k_rot_b, DN, preferred_element_type=F32)) * scale
        s = jnp.where(causal, s, -1e30)
        s = s - jnp.max(s, axis=-1, keepdims=True)
        p = jnp.exp(s)
        p = p / jnp.sum(p, axis=-1, keepdims=True)         # exact divide (no approx reciprocal)
        o_h = lax.dot_general(p.astype(BF), vh, DNT, preferred_element_type=F32)
        # per-head slice of out_proj fused here (sum over heads == out_proj(concat(heads)))
        acc = acc + lax.dot_general(o_h.astype(BF), wout[:, h * vd:(h + 1) * vd],
                                    DN, preferred_element_type=F32)

    x1 = h_prime + acc + out_b                             # residual + attention output

    # ---- ffn_norm + gate (f32 softmax, exact in-kernel top-k -> dense per-expert weights) ----
    xffn = _rms(x1, ffn_w)
    logits = lax.dot_general(xffn, gatew_ref[...], DN, preferred_element_type=F32)
    logits = logits - jnp.max(logits, axis=-1, keepdims=True)
    pe = jnp.exp(logits)
    scores = pe / jnp.sum(pe, axis=-1, keepdims=True)      # original (unbiased) softmax scores
    biased = scores + gateb_ref[...]                       # top-k selection uses biased scores
    eidx = lax.broadcasted_iota(jnp.int32, (S, n_exp), 1)
    remaining = biased
    dense_w = jnp.zeros((S, n_exp), F32)
    for _ in range(topk):                                  # iterative max-masking == torch.topk
        m = jnp.max(remaining, axis=-1, keepdims=True)
        is_max = remaining >= m
        first = jnp.min(jnp.where(is_max, eidx, n_exp), axis=-1, keepdims=True)
        pick = eidx == first
        dense_w = jnp.where(pick, scores, dense_w)         # weights come from unbiased scores
        remaining = jnp.where(pick, -jnp.inf, remaining)
    dense_w = dense_w * router_scale

    # ---- all routed experts + shared expert, unrolled in-kernel (weights fully VMEM-resident) ----
    # TODO(synk): at large num_experts, skip zero-weight experts / group tokens via scalar prefetch.
    xffn_b = xffn.astype(BF)
    y = jnp.zeros((S, D), F32)
    for e in range(n_exp + 1):                             # last one is the shared expert (weight 1)
        h13 = lax.dot_general(xffn_b, w13_ref[e], DN, preferred_element_type=F32) + b13_ref[e]
        g = h13[:, :inter] * h13[:, inter:]                # w1(x) * w3(x)
        act = g * jax.nn.sigmoid(g)                        # SiLU of the product (matches reference)
        oe = lax.dot_general(act.astype(BF), w2_ref[e], DN, preferred_element_type=F32) + b2_ref[e]
        y = y + (oe * dense_w[:, e:e + 1] if e < n_exp else oe)

    o_ref[...] = x1 + y                                    # final residual


# ----------------------------- host-side glue -----------------------------

def precompute_freqs(dim, seq_len, theta=10000.0):
    inv = 1.0 / (theta ** (jnp.arange(0, dim, 2, dtype=F32) / dim))
    t = jnp.arange(seq_len, dtype=F32)
    f = jnp.outer(t, inv)                                  # (S, dim/2)
    return jnp.cos(f), jnp.sin(f)


def _pair_rotation_weight(dim):
    # y = x @ W.T with y[2i] = -x[2i+1], y[2i+1] = x[2i]  (complex-multiply helper for RoPE)
    w = jnp.zeros((dim, dim), F32)
    i = jnp.arange(0, dim, 2)
    w = w.at[i, i + 1].set(-1.0)
    w = w.at[i + 1, i].set(1.0)
    return w


def _lin_w(key, out_f, in_f):
    return jax.random.normal(key, (out_f, in_f), F32) * 0.02


def _lin_b(key, out_f):
    return jax.random.normal(key, (out_f,), F32) * 0.02


def init_params(key, cfg):
    ks = iter(jax.random.split(key, 64))
    nh = cfg.num_heads
    qk_head = cfg.qk_nope_head_dim + cfg.qk_rope_head_dim
    p = {}
    p["proj_w"] = _lin_w(next(ks), cfg.hidden_dim, 2 * cfg.hidden_dim)
    p["proj_b"] = _lin_b(next(ks), cfg.hidden_dim)
    p["rms1_w"] = jnp.ones((cfg.hidden_dim,), F32)
    p["rms2_w"] = jnp.ones((cfg.hidden_dim,), F32)
    p["attn_norm_w"] = jnp.ones((cfg.hidden_dim,), F32)
    p["ffn_norm_w"] = jnp.ones((cfg.hidden_dim,), F32)
    p["q_down_w"] = _lin_w(next(ks), cfg.q_lora_rank, cfg.hidden_dim)
    p["q_norm_w"] = jnp.ones((cfg.q_lora_rank,), F32)
    p["q_up_w"] = _lin_w(next(ks), nh * qk_head, cfg.q_lora_rank)
    p["kv_down_w"] = _lin_w(next(ks), cfg.qk_rope_head_dim + cfg.kv_lora_rank, cfg.hidden_dim)
    p["kv_norm_w"] = jnp.ones((cfg.kv_lora_rank,), F32)
    p["kv_up_w"] = _lin_w(next(ks), nh * (cfg.v_head_dim + cfg.qk_nope_head_dim), cfg.kv_lora_rank)
    p["out_proj_w"] = _lin_w(next(ks), cfg.hidden_dim, nh * cfg.v_head_dim)
    p["out_proj_b"] = _lin_b(next(ks), cfg.hidden_dim)
    p["gate_w"] = _lin_w(next(ks), cfg.num_experts, cfg.hidden_dim)
    p["gate_b"] = jnp.zeros((cfg.num_experts,), F32)       # torch.empty(..) -> deterministic init

    def make_expert():
        return {"w1": _lin_w(next(ks), cfg.moe_inter_dim, cfg.hidden_dim),
                "b1": _lin_b(next(ks), cfg.moe_inter_dim),
                "w3": _lin_w(next(ks), cfg.moe_inter_dim, cfg.hidden_dim),
                "b3": _lin_b(next(ks), cfg.moe_inter_dim),
                "w2": _lin_w(next(ks), cfg.hidden_dim, cfg.moe_inter_dim),
                "b2": _lin_b(next(ks), cfg.hidden_dim)}

    p["experts"] = [make_expert() for _ in range(cfg.num_experts)]
    p["shared_expert"] = make_expert()
    return p


def mtp_forward(p, cfg, h_prev, embed_tokens, cos, sin, start_pos=0):
    assert start_pos == 0
    B, S, D = h_prev.shape
    nh, nope, rope, vd = cfg.num_heads, cfg.qk_nope_head_dim, cfg.qk_rope_head_dim, cfg.v_head_dim
    rq, rkv = cfg.q_lora_rank, cfg.kv_lora_rank
    E, Hm = cfg.num_experts, cfg.moe_inter_dim
    qk_head = nope + rope
    scale = 1.0 / math.sqrt(qk_head)                       # SDPA default scale

    # ---- host-side weight prep (tiny, exact) ----
    wpa = p["proj_w"][:, :D].astype(BF)                    # acts on rms1(h_prev)
    wpb = p["proj_w"][:, D:].astype(BF)                    # acts on rms2(embed)
    vecs = jnp.stack([p["rms1_w"], p["rms2_w"], p["attn_norm_w"], p["ffn_norm_w"],
                      p["proj_b"], p["out_proj_b"]])       # (6, D) f32, single DMA

    # RoPE pair-rotation folded into the (tiny) projection weights: rot(x @ W.T) == x @ (R @ W).T,
    # and bf16(R @ W) == R @ bf16(W) exactly (R is a signed permutation), so this is numerically
    # identical to applying the rotation after the matmul — with zero in-kernel permutes.
    Rq = _pair_rotation_weight(nh * rope)
    Rk = _pair_rotation_weight(rope)
    kd_rope = p["kv_down_w"][:rope]
    kd_c = p["kv_down_w"][rope:]
    w_down_cat = jnp.concatenate(
        [p["q_down_w"], kd_rope, Rk @ kd_rope, kd_c], axis=0).astype(BF)     # (rq+2*rope+rkv, D)

    q_up = p["q_up_w"].reshape(nh, qk_head, rq)
    q_up_nope = q_up[:, :nope, :].reshape(nh * nope, rq)
    q_up_rope = q_up[:, nope:, :].reshape(nh * rope, rq)
    w_qup_cat = jnp.concatenate(
        [q_up_nope, q_up_rope, Rq @ q_up_rope], axis=0).astype(BF)           # (nh*(nope+2*rope), rq)

    kv_up = p["kv_up_w"].reshape(nh, nope + vd, rkv)
    w_kvup_cat = jnp.concatenate(
        [kv_up[:, :nope, :].reshape(nh * nope, rkv),
         kv_up[:, nope:, :].reshape(nh * vd, rkv)], axis=0).astype(BF)       # (nh*(nope+vd), rkv)

    # RoPE tables, interleaved-duplicated, tiled per head (position-only: (S, nh*rope), tiny)
    cos_i = jnp.repeat(cos, 2, axis=-1)
    sin_i = jnp.repeat(sin, 2, axis=-1)
    cos_q = jnp.tile(cos_i, (1, nh))
    sin_q = jnp.tile(sin_i, (1, nh))

    # experts (routed + shared) stacked; everything stays VMEM-resident across the grid
    all_exp = p["experts"] + [p["shared_expert"]]
    w13 = jnp.stack([jnp.concatenate([e["w1"], e["w3"]], axis=0) for e in all_exp]).astype(BF)
    b13 = jnp.stack([jnp.concatenate([e["b1"], e["b3"]]) for e in all_exp])[:, None, :]
    w2 = jnp.stack([e["w2"] for e in all_exp]).astype(BF)
    b2 = jnp.stack([e["b2"] for e in all_exp])[:, None, :]

    kernel = partial(_mtp_block_kernel,
                     nh=nh, nope=nope, rope=rope, vd=vd, rq=rq,
                     n_exp=E, topk=cfg.topk, inter=Hm,
                     scale=scale, router_scale=float(cfg.router_scale))

    out = pl.pallas_call(
        kernel,
        grid=(B,),                                          # >=2 parallel blocks -> both v7x TCs busy
        in_specs=[
            pl.BlockSpec((None, S, D), lambda b: (b, 0, 0)),             # h_prev
            pl.BlockSpec((None, S, D), lambda b: (b, 0, 0)),             # embed_tokens
            pl.BlockSpec((S, nh * rope), lambda b: (0, 0)),              # cos (dup, per-head)
            pl.BlockSpec((S, nh * rope), lambda b: (0, 0)),              # sin (dup, per-head)
            pl.BlockSpec((6, D), lambda b: (0, 0)),                      # stacked D-wide vectors
            pl.BlockSpec((D, D), lambda b: (0, 0)),                      # proj_w[:, :D]
            pl.BlockSpec((D, D), lambda b: (0, 0)),                      # proj_w[:, D:]
            pl.BlockSpec((rq + 2 * rope + rkv, D), lambda b: (0, 0)),    # merged down proj
            pl.BlockSpec((1, rq), lambda b: (0, 0)),                     # q_norm_w
            pl.BlockSpec((nh * (nope + 2 * rope), rq), lambda b: (0, 0)),  # merged q_up
            pl.BlockSpec((1, rkv), lambda b: (0, 0)),                    # kv_norm_w
            pl.BlockSpec((nh * (nope + vd), rkv), lambda b: (0, 0)),     # merged kv_up
            pl.BlockSpec((D, nh * vd), lambda b: (0, 0)),                # out_proj_w
            pl.BlockSpec((E, D), lambda b: (0, 0)),                      # gate_w (f32)
            pl.BlockSpec((1, E), lambda b: (0, 0)),                      # gate_b
            pl.BlockSpec((E + 1, 2 * Hm, D), lambda b: (0, 0, 0)),       # expert w1|w3 stacked
            pl.BlockSpec((E + 1, 1, 2 * Hm), lambda b: (0, 0, 0)),       # expert b1|b3 stacked
            pl.BlockSpec((E + 1, D, Hm), lambda b: (0, 0, 0)),           # expert w2 stacked
            pl.BlockSpec((E + 1, 1, D), lambda b: (0, 0, 0)),            # expert b2 stacked
        ],
        out_specs=pl.BlockSpec((None, S, D), lambda b: (b, 0, 0)),
        out_shape=jax.ShapeDtypeStruct((B, S, D), F32),
        compiler_params=pltpu.CompilerParams(
            dimension_semantics=("parallel",),
            vmem_limit_bytes=32 * 1024 * 1024),
    )(h_prev, embed_tokens, cos_q, sin_q, vecs, wpa, wpb,
      w_down_cat, p["q_norm_w"].reshape(1, rq), w_qup_cat,
      p["kv_norm_w"].reshape(1, rkv), w_kvup_cat,
      p["out_proj_w"].astype(BF), p["gate_w"], p["gate_b"].reshape(1, E),
      w13, b13, w2, b2)
    return out


if __name__ == "__main__":
    cfg = Config()
    key = jax.random.PRNGKey(0)
    kp, kh, ke = jax.random.split(key, 3)
    params = init_params(kp, cfg)

    B, S = cfg.max_batch_size, cfg.max_seq_len
    h_prev = jax.random.normal(kh, (B, S, cfg.hidden_dim), F32)
    embed_tokens = jax.random.normal(ke, (B, S, cfg.hidden_dim), F32)
    cos, sin = precompute_freqs(cfg.qk_rope_head_dim, S)

    fwd = jax.jit(lambda p, h, e, c, s: mtp_forward(p, cfg, h, e, c, s, start_pos=0))
    out = jax.block_until_ready(fwd(params, h_prev, embed_tokens, cos, sin))
    assert out.shape == (B, S, cfg.hidden_dim)
    assert bool(jnp.all(jnp.isfinite(out)))
    print("KERNEL_OK")
</pallas_src>

<mosaic_0001>
module attributes {stable_mosaic.version = 11 : i64} {
  func.func @_mtp_block_kernel(%arg0: i32, %arg1: memref<1x8x32xf32, #tpu.memory_space<vmem>>, %arg2: memref<1x8x32xf32, #tpu.memory_space<vmem>>, %arg3: memref<8x16xf32, #tpu.memory_space<vmem>>, %arg4: memref<8x16xf32, #tpu.memory_space<vmem>>, %arg5: memref<6x32xf32, #tpu.memory_space<vmem>>, %arg6: memref<32x32xbf16, #tpu.memory_space<vmem>>, %arg7: memref<32x32xbf16, #tpu.memory_space<vmem>>, %arg8: memref<48x32xbf16, #tpu.memory_space<vmem>>, %arg9: memref<1x16xf32, #tpu.memory_space<vmem>>, %arg10: memref<64x16xbf16, #tpu.memory_space<vmem>>, %arg11: memref<1x16xf32, #tpu.memory_space<vmem>>, %arg12: memref<64x16xbf16, #tpu.memory_space<vmem>>, %arg13: memref<32x32xbf16, #tpu.memory_space<vmem>>, %arg14: memref<4x32xf32, #tpu.memory_space<vmem>>, %arg15: memref<1x4xf32, #tpu.memory_space<vmem>>, %arg16: memref<5x64x32xbf16, #tpu.memory_space<vmem>>, %arg17: memref<5x1x64xf32, #tpu.memory_space<vmem>>, %arg18: memref<5x32x32xbf16, #tpu.memory_space<vmem>>, %arg19: memref<5x1x32xf32, #tpu.memory_space<vmem>>, %arg20: memref<1x8x32xf32, #tpu.memory_space<vmem>>) attributes {dimension_semantics = [#tpu.dimension_semantics<parallel>], iteration_bounds = array<i64: 2>, scalar_prefetch = 0 : i64, scratch_operands = 0 : i64, tpu.core_type = #tpu.core_type<tc>, window_params = [{transform_indices = @transform_0, window_bounds = array<i64: 1, 8, 32>}, {transform_indices = @transform_1, window_bounds = array<i64: 1, 8, 32>}, {pipeline_mode = #tpu.pipeline_mode<synchronous>, transform_indices = @transform_2, window_bounds = array<i64: 8, 16>}, {pipeline_mode = #tpu.pipeline_mode<synchronous>, transform_indices = @transform_3, window_bounds = array<i64: 8, 16>}, {pipeline_mode = #tpu.pipeline_mode<synchronous>, transform_indices = @transform_4, window_bounds = array<i64: 6, 32>}, {pipeline_mode = #tpu.pipeline_mode<synchronous>, transform_indices = @transform_5, window_bounds = array<i64: 32, 32>}, {pipeline_mode = #tpu.pipeline_mode<synchronous>, transform_indices = @transform_6, window_bounds = array<i64: 32, 32>}, {pipeline_mode = #tpu.pipeline_mode<synchronous>, transform_indices = @transform_7, window_bounds = array<i64: 48, 32>}, {pipeline_mode = #tpu.pipeline_mode<synchronous>, transform_indices = @transform_8, window_bounds = array<i64: 1, 16>}, {pipeline_mode = #tpu.pipeline_mode<synchronous>, transform_indices = @transform_9, window_bounds = array<i64: 64, 16>}, {pipeline_mode = #tpu.pipeline_mode<synchronous>, transform_indices = @transform_10, window_bounds = array<i64: 1, 16>}, {pipeline_mode = #tpu.pipeline_mode<synchronous>, transform_indices = @transform_11, window_bounds = array<i64: 64, 16>}, {pipeline_mode = #tpu.pipeline_mode<synchronous>, transform_indices = @transform_12, window_bounds = array<i64: 32, 32>}, {pipeline_mode = #tpu.pipeline_mode<synchronous>, transform_indices = @transform_13, window_bounds = array<i64: 4, 32>}, {pipeline_mode = #tpu.pipeline_mode<synchronous>, transform_indices = @transform_14, window_bounds = array<i64: 1, 4>}, {pipeline_mode = #tpu.pipeline_mode<synchronous>, transform_indices = @transform_15, window_bounds = array<i64: 5, 64, 32>}, {pipeline_mode = #tpu.pipeline_mode<synchronous>, transform_indices = @transform_16, window_bounds = array<i64: 5, 1, 64>}, {pipeline_mode = #tpu.pipeline_mode<synchronous>, transform_indices = @transform_17, window_bounds = array<i64: 5, 32, 32>}, {pipeline_mode = #tpu.pipeline_mode<synchronous>, transform_indices = @transform_18, window_bounds = array<i64: 5, 1, 32>}, {transform_indices = @transform_19, window_bounds = array<i64: 1, 8, 32>}]} {
    %c0 = arith.constant 0 : index
    %c0_0 = arith.constant 0 : index
    %0 = vector.load %arg5[%c0, %c0_0] : memref<6x32xf32, #tpu.memory_space<vmem>>, vector<6x32xf32>
    %1 = vector.extract_strided_slice %0 {offsets = [0, 0], sizes = [1, 32], strides = [1, 1]} : vector<6x32xf32> to vector<1x32xf32>
    %2 = vector.extract_strided_slice %0 {offsets = [1, 0], sizes = [1, 32], strides = [1, 1]} : vector<6x32xf32> to vector<1x32xf32>
    %3 = vector.extract_strided_slice %0 {offsets = [2, 0], sizes = [1, 32], strides = [1, 1]} : vector<6x32xf32> to vector<1x32xf32>
    %4 = vector.extract_strided_slice %0 {offsets = [3, 0], sizes = [1, 32], strides = [1, 1]} : vector<6x32xf32> to vector<1x32xf32>
    %5 = vector.extract_strided_slice %0 {offsets = [4, 0], sizes = [1, 32], strides = [1, 1]} : vector<6x32xf32> to vector<1x32xf32>
    %6 = vector.extract_strided_slice %0 {offsets = [5, 0], sizes = [1, 32], strides = [1, 1]} : vector<6x32xf32> to vector<1x32xf32>
    %c0_1 = arith.constant 0 : index
    %c0_2 = arith.constant 0 : index
    %c0_3 = arith.constant 0 : index
    %7 = vector.load %arg1[%c0_1, %c0_2, %c0_3] : memref<1x8x32xf32, #tpu.memory_space<vmem>>, vector<1x8x32xf32>
    %8 = vector.shape_cast %7 : vector<1x8x32xf32> to vector<8x32xf32>
    %9 = arith.mulf %8, %8 : vector<8x32xf32>
    %cst = arith.constant dense<0.000000e+00> : vector<8xf32>
    %10 = vector.multi_reduction <add>, %9, %cst [1] : vector<8x32xf32> to vector<8xf32>
    %11 = vector.shape_cast %10 : vector<8xf32> to vector<8x1xf32>
    %cst_4 = arith.constant 3.200000e+01 : f32
    %12 = vector.broadcast %cst_4 : f32 to vector<8x1xf32>
    %13 = arith.divf %11, %12 : vector<8x1xf32>
    %cst_5 = arith.constant 1.1920929E-7 : f32
    %14 = vector.broadcast %cst_5 : f32 to vector<8x1xf32>
    %15 = arith.addf %13, %14 : vector<8x1xf32>
    %16 = math.rsqrt %15 : vector<8x1xf32>
    %17 = vector.broadcast %16 : vector<8x1xf32> to vector<8x32xf32>
    %18 = arith.mulf %8, %17 : vector<8x32xf32>
    %19 = vector.broadcast %1 : vector<1x32xf32> to vector<8x32xf32>
    %20 = arith.mulf %18, %19 : vector<8x32xf32>
    %21 = arith.truncf %20 : vector<8x32xf32> to vector<8x32xbf16>
    %c0_6 = arith.constant 0 : index
    %c0_7 = arith.constant 0 : index
    %c0_8 = arith.constant 0 : index
    %22 = vector.load %arg2[%c0_6, %c0_7, %c0_8] : memref<1x8x32xf32, #tpu.memory_space<vmem>>, vector<1x8x32xf32>
    %23 = vector.shape_cast %22 : vector<1x8x32xf32> to vector<8x32xf32>
    %24 = arith.mulf %23, %23 : vector<8x32xf32>
    %cst_9 = arith.constant dense<0.000000e+00> : vector<8xf32>
    %25 = vector.multi_reduction <add>, %24, %cst_9 [1] : vector<8x32xf32> to vector<8xf32>
    %26 = vector.shape_cast %25 : vector<8xf32> to vector<8x1xf32>
    %cst_10 = arith.constant 3.200000e+01 : f32
    %27 = vector.broadcast %cst_10 : f32 to vector<8x1xf32>
    %28 = arith.divf %26, %27 : vector<8x1xf32>
    %cst_11 = arith.constant 1.1920929E-7 : f32
    %29 = vector.broadcast %cst_11 : f32 to vector<8x1xf32>
    %30 = arith.addf %28, %29 : vector<8x1xf32>
    %31 = math.rsqrt %30 : vector<8x1xf32>
    %32 = vector.broadcast %31 : vector<8x1xf32> to vector<8x32xf32>
    %33 = arith.mulf %23, %32 : vector<8x32xf32>
    %34 = vector.broadcast %2 : vector<1x32xf32> to vector<8x32xf32>
    %35 = arith.mulf %33, %34 : vector<8x32xf32>
    %36 = arith.truncf %35 : vector<8x32xf32> to vector<8x32xbf16>
    %c0_12 = arith.constant 0 : index
    %c0_13 = arith.constant 0 : index
    %37 = vector.load %arg6[%c0_12, %c0_13] : memref<32x32xbf16, #tpu.memory_space<vmem>>, vector<32x32xbf16>
    %cst_14 = arith.constant dense<0.000000e+00> : vector<8x32xf32>
    %38 = tpu.matmul %21, %37, %cst_14 {dimension_numbers = #tpu.dot_dimension_numbers<[1], [1], [0], [0], [0, 0, 1, 0], [], []>} : vector<8x32xbf16>, vector<32x32xbf16>, vector<8x32xf32> -> vector<8x32xf32>
    %c0_15 = arith.constant 0 : index
    %c0_16 = arith.constant 0 : index
    %39 = vector.load %arg7[%c0_15, %c0_16] : memref<32x32xbf16, #tpu.memory_space<vmem>>, vector<32x32xbf16>
    %cst_17 = arith.constant dense<0.000000e+00> : vector<8x32xf32>
    %40 = tpu.matmul %36, %39, %cst_17 {dimension_numbers = #tpu.dot_dimension_numbers<[1], [1], [0], [0], [0, 0, 1, 0], [], []>} : vector<8x32xbf16>, vector<32x32xbf16>, vector<8x32xf32> -> vector<8x32xf32>
    %41 = arith.addf %38, %40 : vector<8x32xf32>
    %42 = vector.broadcast %5 : vector<1x32xf32> to vector<8x32xf32>
    %43 = arith.addf %41, %42 : vector<8x32xf32>
    %44 = arith.mulf %43, %43 : vector<8x32xf32>
    %cst_18 = arith.constant dense<0.000000e+00> : vector<8xf32>
    %45 = vector.multi_reduction <add>, %44, %cst_18 [1] : vector<8x32xf32> to vector<8xf32>
    %46 = vector.shape_cast %45 : vector<8xf32> to vector<8x1xf32>
    %cst_19 = arith.constant 3.200000e+01 : f32
    %47 = vector.broadcast %cst_19 : f32 to vector<8x1xf32>
    %48 = arith.divf %46, %47 : vector<8x1xf32>
    %cst_20 = arith.constant 1.1920929E-7 : f32
    %49 = vector.broadcast %cst_20 : f32 to vector<8x1xf32>
    %50 = arith.addf %48, %49 : vector<8x1xf32>
    %51 = math.rsqrt %50 : vector<8x1xf32>
    %52 = vector.broadcast %51 : vector<8x1xf32> to vector<8x32xf32>
    %53 = arith.mulf %43, %52 : vector<8x32xf32>
    %54 = vector.broadcast %3 : vector<1x32xf32> to vector<8x32xf32>
    %55 = arith.mulf %53, %54 : vector<8x32xf32>
    %56 = arith.truncf %55 : vector<8x32xf32> to vector<8x32xbf16>
    %c0_21 = arith.constant 0 : index
    %c0_22 = arith.constant 0 : index
    %57 = vector.load %arg8[%c0_21, %c0_22] : memref<48x32xbf16, #tpu.memory_space<vmem>>, vector<48x32xbf16>
    %cst_23 = arith.constant dense<0.000000e+00> : vector<8x48xf32>
    %58 = tpu.matmul %56, %57, %cst_23 {dimension_numbers = #tpu.dot_dimension_numbers<[1], [1], [0], [0], [0, 0, 1, 0], [], []>} : vector<8x32xbf16>, vector<48x32xbf16>, vector<8x48xf32> -> vector<8x48xf32>
    %59 = vector.extract_strided_slice %58 {offsets = [0, 0], sizes = [8, 16], strides = [1, 1]} : vector<8x48xf32> to vector<8x16xf32>
    %60 = vector.extract_strided_slice %58 {offsets = [0, 16], sizes = [8, 8], strides = [1, 1]} : vector<8x48xf32> to vector<8x8xf32>
    %61 = vector.extract_strided_slice %58 {offsets = [0, 24], sizes = [8, 8], strides = [1, 1]} : vector<8x48xf32> to vector<8x8xf32>
    %62 = vector.extract_strided_slice %58 {offsets = [0, 32], sizes = [8, 16], strides = [1, 1]} : vector<8x48xf32> to vector<8x16xf32>
    %c0_24 = arith.constant 0 : index
    %c0_25 = arith.constant 0 : index
    %63 = vector.load %arg9[%c0_24, %c0_25] : memref<1x16xf32, #tpu.memory_space<vmem>>, vector<1x16xf32>
    %64 = arith.mulf %59, %59 : vector<8x16xf32>
    %cst_26 = arith.constant dense<0.000000e+00> : vector<8xf32>
    %65 = vector.multi_reduction <add>, %64, %cst_26 [1] : vector<8x16xf32> to vector<8xf32>
    %66 = vector.shape_cast %65 : vector<8xf32> to vector<8x1xf32>
    %cst_27 = arith.constant 1.600000e+01 : f32
    %67 = vector.broadcast %cst_27 : f32 to vector<8x1xf32>
    %68 = arith.divf %66, %67 : vector<8x1xf32>
    %cst_28 = arith.constant 1.1920929E-7 : f32
    %69 = vector.broadcast %cst_28 : f32 to vector<8x1xf32>
    %70 = arith.addf %68, %69 : vector<8x1xf32>
    %71 = math.rsqrt %70 : vector<8x1xf32>
    %72 = vector.broadcast %71 : vector<8x1xf32> to vector<8x16xf32>
    %73 = arith.mulf %59, %72 : vector<8x16xf32>
    %74 = vector.broadcast %63 : vector<1x16xf32> to vector<8x16xf32>
    %75 = arith.mulf %73, %74 : vector<8x16xf32>
    %76 = arith.truncf %75 : vector<8x16xf32> to vector<8x16xbf16>
    %c0_29 = arith.constant 0 : index
    %c0_30 = arith.constant 0 : index
    %77 = vector.load %arg10[%c0_29, %c0_30] : memref<64x16xbf16, #tpu.memory_space<vmem>>, vector<64x16xbf16>
    %cst_31 = arith.constant dense<0.000000e+00> : vector<8x64xf32>
    %78 = tpu.matmul %76, %77, %cst_31 {dimension_numbers = #tpu.dot_dimension_numbers<[1], [1], [0], [0], [0, 0, 1, 0], [], []>} : vector<8x16xbf16>, vector<64x16xbf16>, vector<8x64xf32> -> vector<8x64xf32>
    %79 = vector.extract_strided_slice %78 {offsets = [0, 0], sizes = [8, 32], strides = [1, 1]} : vector<8x64xf32> to vector<8x32xf32>
    %80 = vector.extract_strided_slice %78 {offsets = [0, 32], sizes = [8, 16], strides = [1, 1]} : vector<8x64xf32> to vector<8x16xf32>
    %81 = vector.extract_strided_slice %78 {offsets = [0, 48], sizes = [8, 16], strides = [1, 1]} : vector<8x64xf32> to vector<8x16xf32>
    %c0_32 = arith.constant 0 : index
    %c0_33 = arith.constant 0 : index
    %82 = vector.load %arg3[%c0_32, %c0_33] : memref<8x16xf32, #tpu.memory_space<vmem>>, vector<8x16xf32>
    %c0_34 = arith.constant 0 : index
    %c0_35 = arith.constant 0 : index
    %83 = vector.load %arg4[%c0_34, %c0_35] : memref<8x16xf32, #tpu.memory_space<vmem>>, vector<8x16xf32>
    %84 = arith.mulf %80, %82 : vector<8x16xf32>
    %85 = arith.mulf %81, %83 : vector<8x16xf32>
    %86 = arith.addf %84, %85 : vector<8x16xf32>
    %87 = vector.extract_strided_slice %82 {offsets = [0, 0], sizes = [8, 8], strides = [1, 1]} : vector<8x16xf32> to vector<8x8xf32>
    %88 = arith.mulf %60, %87 : vector<8x8xf32>
    %89 = vector.extract_strided_slice %83 {offsets = [0, 0], sizes = [8, 8], strides = [1, 1]} : vector<8x16xf32> to vector<8x8xf32>
    %90 = arith.mulf %61, %89 : vector<8x8xf32>
    %91 = arith.addf %88, %90 : vector<8x8xf32>
    %c0_36 = arith.constant 0 : index
    %c0_37 = arith.constant 0 : index
    %92 = vector.load %arg11[%c0_36, %c0_37] : memref<1x16xf32, #tpu.memory_space<vmem>>, vector<1x16xf32>
    %93 = arith.mulf %62, %62 : vector<8x16xf32>
    %cst_38 = arith.constant dense<0.000000e+00> : vector<8xf32>
    %94 = vector.multi_reduction <add>, %93, %cst_38 [1] : vector<8x16xf32> to vector<8xf32>
    %95 = vector.shape_cast %94 : vector<8xf32> to vector<8x1xf32>
    %cst_39 = arith.constant 1.600000e+01 : f32
    %96 = vector.broadcast %cst_39 : f32 to vector<8x1xf32>
    %97 = arith.divf %95, %96 : vector<8x1xf32>
    %cst_40 = arith.constant 1.1920929E-7 : f32
    %98 = vector.broadcast %cst_40 : f32 to vector<8x1xf32>
    %99 = arith.addf %97, %98 : vector<8x1xf32>
    %100 = math.rsqrt %99 : vector<8x1xf32>
    %101 = vector.broadcast %100 : vector<8x1xf32> to vector<8x16xf32>
    %102 = arith.mulf %62, %101 : vector<8x16xf32>
    %103 = vector.broadcast %92 : vector<1x16xf32> to vector<8x16xf32>
    %104 = arith.mulf %102, %103 : vector<8x16xf32>
    %105 = arith.truncf %104 : vector<8x16xf32> to vector<8x16xbf16>
    %c0_41 = arith.constant 0 : index
    %c0_42 = arith.constant 0 : index
    %106 = vector.load %arg12[%c0_41, %c0_42] : memref<64x16xbf16, #tpu.memory_space<vmem>>, vector<64x16xbf16>
    %cst_43 = arith.constant dense<0.000000e+00> : vector<8x64xf32>
    %107 = tpu.matmul %105, %106, %cst_43 {dimension_numbers = #tpu.dot_dimension_numbers<[1], [1], [0], [0], [0, 0, 1, 0], [], []>} : vector<8x16xbf16>, vector<64x16xbf16>, vector<8x64xf32> -> vector<8x64xf32>
    %108 = vector.extract_strided_slice %107 {offsets = [0, 0], sizes = [8, 32], strides = [1, 1]} : vector<8x64xf32> to vector<8x32xf32>
    %109 = vector.extract_strided_slice %107 {offsets = [0, 32], sizes = [8, 32], strides = [1, 1]} : vector<8x64xf32> to vector<8x32xf32>
    %110 = tpu.iota {dimensions = array<i32: 0>} : vector<8x8xi32>
    %111 = tpu.iota {dimensions = array<i32: 1>} : vector<8x8xi32>
    %112 = arith.cmpi sle, %111, %110 : vector<8x8xi32>
    %113 = arith.truncf %91 : vector<8x8xf32> to vector<8x8xbf16>
    %c0_44 = arith.constant 0 : index
    %c0_45 = arith.constant 0 : index
    %114 = vector.load %arg13[%c0_44, %c0_45] : memref<32x32xbf16, #tpu.memory_space<vmem>>, vector<32x32xbf16>
    %cst_46 = arith.constant 0.000000e+00 : f32
    %115 = vector.broadcast %cst_46 : f32 to vector<8x32xf32>
    %116 = vector.extract_strided_slice %79 {offsets = [0, 0], sizes = [8, 16], strides = [1, 1]} : vector<8x32xf32> to vector<8x16xf32>
    %117 = arith.truncf %116 : vector<8x16xf32> to vector<8x16xbf16>
    %118 = vector.extract_strided_slice %86 {offsets = [0, 0], sizes = [8, 8], strides = [1, 1]} : vector<8x16xf32> to vector<8x8xf32>
    %119 = arith.truncf %118 : vector<8x8xf32> to vector<8x8xbf16>
    %120 = vector.extract_strided_slice %108 {offsets = [0, 0], sizes = [8, 16], strides = [1, 1]} : vector<8x32xf32> to vector<8x16xf32>
    %121 = arith.truncf %120 : vector<8x16xf32> to vector<8x16xbf16>
    %122 = vector.extract_strided_slice %109 {offsets = [0, 0], sizes = [8, 16], strides = [1, 1]} : vector<8x32xf32> to vector<8x16xf32>
    %123 = arith.truncf %122 : vector<8x16xf32> to vector<8x16xbf16>
    %cst_47 = arith.constant dense<0.000000e+00> : vector<8x8xf32>
    %124 = tpu.matmul %117, %121, %cst_47 {dimension_numbers = #tpu.dot_dimension_numbers<[1], [1], [0], [0], [0, 0, 1, 0], [], []>} : vector<8x16xbf16>, vector<8x16xbf16>, vector<8x8xf32> -> vector<8x8xf32>
    %cst_48 = arith.constant dense<0.000000e+00> : vector<8x8xf32>
    %125 = tpu.matmul %119, %113, %cst_48 {dimension_numbers = #tpu.dot_dimension_numbers<[1], [1], [0], [0], [0, 0, 1, 0], [], []>} : vector<8x8xbf16>, vector<8x8xbf16>, vector<8x8xf32> -> vector<8x8xf32>
    %126 = arith.addf %124, %125 : vector<8x8xf32>
    %cst_49 = arith.constant 0.204124153 : f32
    %127 = vector.broadcast %cst_49 : f32 to vector<8x8xf32>
    %128 = arith.mulf %126, %127 : vector<8x8xf32>
    %cst_50 = arith.constant -1.000000e+30 : f32
    %129 = vector.broadcast %cst_50 : f32 to vector<8x8xf32>
    %130 = arith.select %112, %128, %129 : vector<8x8xi1>, vector<8x8xf32>
    %cst_51 = arith.constant dense<0xFF800000> : vector<8xf32>
    %131 = vector.multi_reduction <maximumf>, %130, %cst_51 [1] : vector<8x8xf32> to vector<8xf32>
    %132 = vector.shape_cast %131 : vector<8xf32> to vector<8x1xf32>
    %133 = vector.broadcast %132 : vector<8x1xf32> to vector<8x8xf32>
    %134 = arith.subf %130, %133 : vector<8x8xf32>
    %135 = math.exp %134 : vector<8x8xf32>
    %cst_52 = arith.constant dense<0.000000e+00> : vector<8xf32>
    %136 = vector.multi_reduction <add>, %135, %cst_52 [1] : vector<8x8xf32> to vector<8xf32>
    %137 = vector.shape_cast %136 : vector<8xf32> to vector<8x1xf32>
    %138 = vector.broadcast %137 : vector<8x1xf32> to vector<8x8xf32>
    %139 = arith.divf %135, %138 : vector<8x8xf32>
    %140 = arith.truncf %139 : vector<8x8xf32> to vector<8x8xbf16>
    %cst_53 = arith.constant dense<0.000000e+00> : vector<8x16xf32>
    %141 = tpu.matmul %140, %123, %cst_53 {dimension_numbers = #tpu.dot_dimension_numbers<[1], [0], [0], [1], [0, 0, 1, 1], [], []>} : vector<8x8xbf16>, vector<8x16xbf16>, vector<8x16xf32> -> vector<8x16xf32>
    %142 = arith.truncf %141 : vector<8x16xf32> to vector<8x16xbf16>
    %143 = vector.extract_strided_slice %114 {offsets = [0, 0], sizes = [32, 16], strides = [1, 1]} : vector<32x32xbf16> to vector<32x16xbf16>
    %cst_54 = arith.constant dense<0.000000e+00> : vector<8x32xf32>
    %144 = tpu.matmul %142, %143, %cst_54 {dimension_numbers = #tpu.dot_dimension_numbers<[1], [1], [0], [0], [0, 0, 1, 0], [], []>} : vector<8x16xbf16>, vector<32x16xbf16>, vector<8x32xf32> -> vector<8x32xf32>
    %145 = arith.addf %115, %144 : vector<8x32xf32>
    %146 = vector.extract_strided_slice %79 {offsets = [0, 16], sizes = [8, 16], strides = [1, 1]} : vector<8x32xf32> to vector<8x16xf32>
    %147 = arith.truncf %146 : vector<8x16xf32> to vector<8x16xbf16>
    %148 = vector.extract_strided_slice %86 {offsets = [0, 8], sizes = [8, 8], strides = [1, 1]} : vector<8x16xf32> to vector<8x8xf32>
    %149 = arith.truncf %148 : vector<8x8xf32> to vector<8x8xbf16>
    %150 = vector.extract_strided_slice %108 {offsets = [0, 16], sizes = [8, 16], strides = [1, 1]} : vector<8x32xf32> to vector<8x16xf32>
    %151 = arith.truncf %150 : vector<8x16xf32> to vector<8x16xbf16>
    %152 = vector.extract_strided_slice %109 {offsets = [0, 16], sizes = [8, 16], strides = [1, 1]} : vector<8x32xf32> to vector<8x16xf32>
    %153 = arith.truncf %152 : vector<8x16xf32> to vector<8x16xbf16>
    %cst_55 = arith.constant dense<0.000000e+00> : vector<8x8xf32>
    %154 = tpu.matmul %147, %151, %cst_55 {dimension_numbers = #tpu.dot_dimension_numbers<[1], [1], [0], [0], [0, 0, 1, 0], [], []>} : vector<8x16xbf16>, vector<8x16xbf16>, vector<8x8xf32> -> vector<8x8xf32>
    %cst_56 = arith.constant dense<0.000000e+00> : vector<8x8xf32>
    %155 = tpu.matmul %149, %113, %cst_56 {dimension_numbers = #tpu.dot_dimension_numbers<[1], [1], [0], [0], [0, 0, 1, 0], [], []>} : vector<8x8xbf16>, vector<8x8xbf16>, vector<8x8xf32> -> vector<8x8xf32>
    %156 = arith.addf %154, %155 : vector<8x8xf32>
    %cst_57 = arith.constant 0.204124153 : f32
    %157 = vector.broadcast %cst_57 : f32 to vector<8x8xf32>
    %158 = arith.mulf %156, %157 : vector<8x8xf32>
    %cst_58 = arith.constant -1.000000e+30 : f32
    %159 = vector.broadcast %cst_58 : f32 to vector<8x8xf32>
    %160 = arith.select %112, %158, %159 : vector<8x8xi1>, vector<8x8xf32>
    %cst_59 = arith.constant dense<0xFF800000> : vector<8xf32>
    %161 = vector.multi_reduction <maximumf>, %160, %cst_59 [1] : vector<8x8xf32> to vector<8xf32>
    %162 = vector.shape_cast %161 : vector<8xf32> to vector<8x1xf32>
    %163 = vector.broadcast %162 : vector<8x1xf32> to vector<8x8xf32>
    %164 = arith.subf %160, %163 : vector<8x8xf32>
    %165 = math.exp %164 : vector<8x8xf32>
    %cst_60 = arith.constant dense<0.000000e+00> : vector<8xf32>
    %166 = vector.multi_reduction <add>, %165, %cst_60 [1] : vector<8x8xf32> to vector<8xf32>
    %167 = vector.shape_cast %166 : vector<8xf32> to vector<8x1xf32>
    %168 = vector.broadcast %167 : vector<8x1xf32> to vector<8x8xf32>
    %169 = arith.divf %165, %168 : vector<8x8xf32>
    %170 = arith.truncf %169 : vector<8x8xf32> to vector<8x8xbf16>
    %cst_61 = arith.constant dense<0.000000e+00> : vector<8x16xf32>
    %171 = tpu.matmul %170, %153, %cst_61 {dimension_numbers = #tpu.dot_dimension_numbers<[1], [0], [0], [1], [0, 0, 1, 1], [], []>} : vector<8x8xbf16>, vector<8x16xbf16>, vector<8x16xf32> -> vector<8x16xf32>
    %172 = arith.truncf %171 : vector<8x16xf32> to vector<8x16xbf16>
    %173 = vector.extract_strided_slice %114 {offsets = [0, 16], sizes = [32, 16], strides = [1, 1]} : vector<32x32xbf16> to vector<32x16xbf16>
    %cst_62 = arith.constant dense<0.000000e+00> : vector<8x32xf32>
    %174 = tpu.matmul %172, %173, %cst_62 {dimension_numbers = #tpu.dot_dimension_numbers<[1], [1], [0], [0], [0, 0, 1, 0], [], []>} : vector<8x16xbf16>, vector<32x16xbf16>, vector<8x32xf32> -> vector<8x32xf32>
    %175 = arith.addf %145, %174 : vector<8x32xf32>
    %176 = arith.addf %43, %175 : vector<8x32xf32>
    %177 = vector.broadcast %6 : vector<1x32xf32> to vector<8x32xf32>
    %178 = arith.addf %176, %177 : vector<8x32xf32>
    %179 = arith.mulf %178, %178 : vector<8x32xf32>
    %cst_63 = arith.constant dense<0.000000e+00> : vector<8xf32>
    %180 = vector.multi_reduction <add>, %179, %cst_63 [1] : vector<8x32xf32> to vector<8xf32>
    %181 = vector.shape_cast %180 : vector<8xf32> to vector<8x1xf32>
    %cst_64 = arith.constant 3.200000e+01 : f32
    %182 = vector.broadcast %cst_64 : f32 to vector<8x1xf32>
    %183 = arith.divf %181, %182 : vector<8x1xf32>
    %cst_65 = arith.constant 1.1920929E-7 : f32
    %184 = vector.broadcast %cst_65 : f32 to vector<8x1xf32>
    %185 = arith.addf %183, %184 : vector<8x1xf32>
    %186 = math.rsqrt %185 : vector<8x1xf32>
    %187 = vector.broadcast %186 : vector<8x1xf32> to vector<8x32xf32>
    %188 = arith.mulf %178, %187 : vector<8x32xf32>
    %189 = vector.broadcast %4 : vector<1x32xf32> to vector<8x32xf32>
    %190 = arith.mulf %188, %189 : vector<8x32xf32>
    %c0_66 = arith.constant 0 : index
    %c0_67 = arith.constant 0 : index
    %191 = vector.load %arg14[%c0_66, %c0_67] : memref<4x32xf32, #tpu.memory_space<vmem>>, vector<4x32xf32>
    %cst_68 = arith.constant dense<0.000000e+00> : vector<8x4xf32>
    %192 = tpu.matmul %190, %191, %cst_68 {dimension_numbers = #tpu.dot_dimension_numbers<[1], [1], [0], [0], [0, 0, 1, 0], [], []>} : vector<8x32xf32>, vector<4x32xf32>, vector<8x4xf32> -> vector<8x4xf32>
    %cst_69 = arith.constant dense<0xFF800000> : vector<8xf32>
    %193 = vector.multi_reduction <maximumf>, %192, %cst_69 [1] : vector<8x4xf32> to vector<8xf32>
    %194 = vector.shape_cast %193 : vector<8xf32> to vector<8x1xf32>
    %195 = vector.broadcast %194 : vector<8x1xf32> to vector<8x4xf32>
    %196 = arith.subf %192, %195 : vector<8x4xf32>
    %197 = math.exp %196 : vector<8x4xf32>
    %cst_70 = arith.constant dense<0.000000e+00> : vector<8xf32>
    %198 = vector.multi_reduction <add>, %197, %cst_70 [1] : vector<8x4xf32> to vector<8xf32>
    %199 = vector.shape_cast %198 : vector<8xf32> to vector<8x1xf32>
    %200 = vector.broadcast %199 : vector<8x1xf32> to vector<8x4xf32>
    %201 = arith.divf %197, %200 : vector<8x4xf32>
    %c0_71 = arith.constant 0 : index
    %c0_72 = arith.constant 0 : index
    %202 = vector.load %arg15[%c0_71, %c0_72] : memref<1x4xf32, #tpu.memory_space<vmem>>, vector<1x4xf32>
    %203 = vector.broadcast %202 : vector<1x4xf32> to vector<8x4xf32>
    %204 = arith.addf %201, %203 : vector<8x4xf32>
    %205 = tpu.iota {dimensions = array<i32: 1>} : vector<8x4xi32>
    %cst_73 = arith.constant 0.000000e+00 : f32
    %206 = vector.broadcast %cst_73 : f32 to vector<8x4xf32>
    %cst_74 = arith.constant dense<0xFF800000> : vector<8xf32>
    %207 = vector.multi_reduction <maximumf>, %204, %cst_74 [1] : vector<8x4xf32> to vector<8xf32>
    %208 = vector.shape_cast %207 : vector<8xf32> to vector<8x1xf32>
    %209 = vector.broadcast %208 : vector<8x1xf32> to vector<8x4xf32>
    %210 = arith.cmpf oge, %204, %209 : vector<8x4xf32>
    %c4_i32 = arith.constant 4 : i32
    %211 = vector.broadcast %c4_i32 : i32 to vector<8x4xi32>
    %212 = arith.select %210, %205, %211 : vector<8x4xi1>, vector<8x4xi32>
    %cst_75 = arith.constant dense<2147483647> : vector<8xi32>
    %213 = vector.multi_reduction <minsi>, %212, %cst_75 [1] : vector<8x4xi32> to vector<8xi32>
    %214 = vector.shape_cast %213 : vector<8xi32> to vector<8x1xi32>
    %215 = vector.broadcast %214 : vector<8x1xi32> to vector<8x4xi32>
    %216 = arith.cmpi eq, %205, %215 : vector<8x4xi32>
    %217 = arith.select %216, %201, %206 : vector<8x4xi1>, vector<8x4xf32>
    %cst_76 = arith.constant 0xFF800000 : f32
    %218 = vector.broadcast %cst_76 : f32 to vector<8x4xf32>
    %219 = arith.select %216, %218, %204 : vector<8x4xi1>, vector<8x4xf32>
    %cst_77 = arith.constant dense<0xFF800000> : vector<8xf32>
    %220 = vector.multi_reduction <maximumf>, %219, %cst_77 [1] : vector<8x4xf32> to vector<8xf32>
    %221 = vector.shape_cast %220 : vector<8xf32> to vector<8x1xf32>
    %222 = vector.broadcast %221 : vector<8x1xf32> to vector<8x4xf32>
    %223 = arith.cmpf oge, %219, %222 : vector<8x4xf32>
    %c4_i32_78 = arith.constant 4 : i32
    %224 = vector.broadcast %c4_i32_78 : i32 to vector<8x4xi32>
    %225 = arith.select %223, %205, %224 : vector<8x4xi1>, vector<8x4xi32>
    %cst_79 = arith.constant dense<2147483647> : vector<8xi32>
    %226 = vector.multi_reduction <minsi>, %225, %cst_79 [1] : vector<8x4xi32> to vector<8xi32>
    %227 = vector.shape_cast %226 : vector<8xi32> to vector<8x1xi32>
    %228 = vector.broadcast %227 : vector<8x1xi32> to vector<8x4xi32>
    %229 = arith.cmpi eq, %205, %228 : vector<8x4xi32>
    %230 = arith.select %229, %201, %217 : vector<8x4xi1>, vector<8x4xf32>
    %cst_80 = arith.constant 1.000000e+00 : f32
    %231 = vector.broadcast %cst_80 : f32 to vector<8x4xf32>
    %232 = arith.mulf %230, %231 : vector<8x4xf32>
    %233 = arith.truncf %190 : vector<8x32xf32> to vector<8x32xbf16>
    %cst_81 = arith.constant 0.000000e+00 : f32
    %234 = vector.broadcast %cst_81 : f32 to vector<8x32xf32>
    %c0_82 = arith.constant 0 : index
    %c0_83 = arith.constant 0 : index
    %c0_84 = arith.constant 0 : index
    %235 = vector.load %arg16[%c0_82, %c0_83, %c0_84] : memref<5x64x32xbf16, #tpu.memory_space<vmem>>, vector<1x64x32xbf16>
    %236 = vector.shape_cast %235 : vector<1x64x32xbf16> to vector<64x32xbf16>
    %cst_85 = arith.constant dense<0.000000e+00> : vector<8x64xf32>
    %237 = tpu.matmul %233, %236, %cst_85 {dimension_numbers = #tpu.dot_dimension_numbers<[1], [1], [0], [0], [0, 0, 1, 0], [], []>} : vector<8x32xbf16>, vector<64x32xbf16>, vector<8x64xf32> -> vector<8x64xf32>
    %c0_86 = arith.constant 0 : index
    %c0_87 = arith.constant 0 : index
    %c0_88 = arith.constant 0 : index
    %238 = vector.load %arg17[%c0_86, %c0_87, %c0_88] : memref<5x1x64xf32, #tpu.memory_space<vmem>>, vector<1x1x64xf32>
    %239 = vector.shape_cast %238 : vector<1x1x64xf32> to vector<1x64xf32>
    %240 = vector.broadcast %239 : vector<1x64xf32> to vector<8x64xf32>
    %241 = arith.addf %237, %240 : vector<8x64xf32>
    %242 = vector.extract_strided_slice %241 {offsets = [0, 0], sizes = [8, 32], strides = [1, 1]} : vector<8x64xf32> to vector<8x32xf32>
    %243 = vector.extract_strided_slice %241 {offsets = [0, 32], sizes = [8, 32], strides = [1, 1]} : vector<8x64xf32> to vector<8x32xf32>
    %244 = arith.mulf %242, %243 : vector<8x32xf32>
    %245 = arith.negf %244 : vector<8x32xf32>
    %246 = math.exp %245 : vector<8x32xf32>
    %cst_89 = arith.constant 1.000000e+00 : f32
    %247 = vector.broadcast %cst_89 : f32 to vector<8x32xf32>
    %248 = arith.addf %247, %246 : vector<8x32xf32>
    %249 = arith.divf %247, %248 : vector<8x32xf32>
    %250 = arith.mulf %244, %249 : vector<8x32xf32>
    %251 = arith.truncf %250 : vector<8x32xf32> to vector<8x32xbf16>
    %c0_90 = arith.constant 0 : index
    %c0_91 = arith.constant 0 : index
    %c0_92 = arith.constant 0 : index
    %252 = vector.load %arg18[%c0_90, %c0_91, %c0_92] : memref<5x32x32xbf16, #tpu.memory_space<vmem>>, vector<1x32x32xbf16>
    %253 = vector.shape_cast %252 : vector<1x32x32xbf16> to vector<32x32xbf16>
    %cst_93 = arith.constant dense<0.000000e+00> : vector<8x32xf32>
    %254 = tpu.matmul %251, %253, %cst_93 {dimension_numbers = #tpu.dot_dimension_numbers<[1], [1], [0], [0], [0, 0, 1, 0], [], []>} : vector<8x32xbf16>, vector<32x32xbf16>, vector<8x32xf32> -> vector<8x32xf32>
    %c0_94 = arith.constant 0 : index
    %c0_95 = arith.constant 0 : index
    %c0_96 = arith.constant 0 : index
    %255 = vector.load %arg19[%c0_94, %c0_95, %c0_96] : memref<5x1x32xf32, #tpu.memory_space<vmem>>, vector<1x1x32xf32>
    %256 = vector.shape_cast %255 : vector<1x1x32xf32> to vector<1x32xf32>
    %257 = vector.broadcast %256 : vector<1x32xf32> to vector<8x32xf32>
    %258 = arith.addf %254, %257 : vector<8x32xf32>
    %259 = vector.extract_strided_slice %232 {offsets = [0, 0], sizes = [8, 1], strides = [1, 1]} : vector<8x4xf32> to vector<8x1xf32>
    %260 = vector.broadcast %259 : vector<8x1xf32> to vector<8x32xf32>
    %261 = arith.mulf %258, %260 : vector<8x32xf32>
    %262 = arith.addf %234, %261 : vector<8x32xf32>
    %c1 = arith.constant 1 : index
    %c0_97 = arith.constant 0 : index
    %c0_98 = arith.constant 0 : index
    %263 = vector.load %arg16[%c1, %c0_97, %c0_98] : memref<5x64x32xbf16, #tpu.memory_space<vmem>>, vector<1x64x32xbf16>
    %264 = vector.shape_cast %263 : vector<1x64x32xbf16> to vector<64x32xbf16>
    %cst_99 = arith.constant dense<0.000000e+00> : vector<8x64xf32>
    %265 = tpu.matmul %233, %264, %cst_99 {dimension_numbers = #tpu.dot_dimension_numbers<[1], [1], [0], [0], [0, 0, 1, 0], [], []>} : vector<8x32xbf16>, vector<64x32xbf16>, vector<8x64xf32> -> vector<8x64xf32>
    %c1_100 = arith.constant 1 : index
    %c0_101 = arith.constant 0 : index
    %c0_102 = arith.constant 0 : index
    %266 = vector.load %arg17[%c1_100, %c0_101, %c0_102] : memref<5x1x64xf32, #tpu.memory_space<vmem>>, vector<1x1x64xf32>
    %267 = vector.shape_cast %266 : vector<1x1x64xf32> to vector<1x64xf32>
    %268 = vector.broadcast %267 : vector<1x64xf32> to vector<8x64xf32>
    %269 = arith.addf %265, %268 : vector<8x64xf32>
    %270 = vector.extract_strided_slice %269 {offsets = [0, 0], sizes = [8, 32], strides = [1, 1]} : vector<8x64xf32> to vector<8x32xf32>
    %271 = vector.extract_strided_slice %269 {offsets = [0, 32], sizes = [8, 32], strides = [1, 1]} : vector<8x64xf32> to vector<8x32xf32>
    %272 = arith.mulf %270, %271 : vector<8x32xf32>
    %273 = arith.negf %272 : vector<8x32xf32>
    %274 = math.exp %273 : vector<8x32xf32>
    %cst_103 = arith.constant 1.000000e+00 : f32
    %275 = vector.broadcast %cst_103 : f32 to vector<8x32xf32>
    %276 = arith.addf %275, %274 : vector<8x32xf32>
    %277 = arith.divf %275, %276 : vector<8x32xf32>
    %278 = arith.mulf %272, %277 : vector<8x32xf32>
    %279 = arith.truncf %278 : vector<8x32xf32> to vector<8x32xbf16>
    %c1_104 = arith.constant 1 : index
    %c0_105 = arith.constant 0 : index
    %c0_106 = arith.constant 0 : index
    %280 = vector.load %arg18[%c1_104, %c0_105, %c0_106] : memref<5x32x32xbf16, #tpu.memory_space<vmem>>, vector<1x32x32xbf16>
    %281 = vector.shape_cast %280 : vector<1x32x32xbf16> to vector<32x32xbf16>
    %cst_107 = arith.constant dense<0.000000e+00> : vector<8x32xf32>
    %282 = tpu.matmul %279, %281, %cst_107 {dimension_numbers = #tpu.dot_dimension_numbers<[1], [1], [0], [0], [0, 0, 1, 0], [], []>} : vector<8x32xbf16>, vector<32x32xbf16>, vector<8x32xf32> -> vector<8x32xf32>
    %c1_108 = arith.constant 1 : index
    %c0_109 = arith.constant 0 : index
    %c0_110 = arith.constant 0 : index
    %283 = vector.load %arg19[%c1_108, %c0_109, %c0_110] : memref<5x1x32xf32, #tpu.memory_space<vmem>>, vector<1x1x32xf32>
    %284 = vector.shape_cast %283 : vector<1x1x32xf32> to vector<1x32xf32>
    %285 = vector.broadcast %284 : vector<1x32xf32> to vector<8x32xf32>
    %286 = arith.addf %282, %285 : vector<8x32xf32>
    %287 = vector.extract_strided_slice %232 {offsets = [0, 1], sizes = [8, 1], strides = [1, 1]} : vector<8x4xf32> to vector<8x1xf32>
    %288 = vector.broadcast %287 : vector<8x1xf32> to vector<8x32xf32>
    %289 = arith.mulf %286, %288 : vector<8x32xf32>
    %290 = arith.addf %262, %289 : vector<8x32xf32>
    %c2 = arith.constant 2 : index
    %c0_111 = arith.constant 0 : index
    %c0_112 = arith.constant 0 : index
    %291 = vector.load %arg16[%c2, %c0_111, %c0_112] : memref<5x64x32xbf16, #tpu.memory_space<vmem>>, vector<1x64x32xbf16>
    %292 = vector.shape_cast %291 : vector<1x64x32xbf16> to vector<64x32xbf16>
    %cst_113 = arith.constant dense<0.000000e+00> : vector<8x64xf32>
    %293 = tpu.matmul %233, %292, %cst_113 {dimension_numbers = #tpu.dot_dimension_numbers<[1], [1], [0], [0], [0, 0, 1, 0], [], []>} : vector<8x32xbf16>, vector<64x32xbf16>, vector<8x64xf32> -> vector<8x64xf32>
    %c2_114 = arith.constant 2 : index
    %c0_115 = arith.constant 0 : index
    %c0_116 = arith.constant 0 : index
    %294 = vector.load %arg17[%c2_114, %c0_115, %c0_116] : memref<5x1x64xf32, #tpu.memory_space<vmem>>, vector<1x1x64xf32>
    %295 = vector.shape_cast %294 : vector<1x1x64xf32> to vector<1x64xf32>
    %296 = vector.broadcast %295 : vector<1x64xf32> to vector<8x64xf32>
    %297 = arith.addf %293, %296 : vector<8x64xf32>
    %298 = vector.extract_strided_slice %297 {offsets = [0, 0], sizes = [8, 32], strides = [1, 1]} : vector<8x64xf32> to vector<8x32xf32>
    %299 = vector.extract_strided_slice %297 {offsets = [0, 32], sizes = [8, 32], strides = [1, 1]} : vector<8x64xf32> to vector<8x32xf32>
    %300 = arith.mulf %298, %299 : vector<8x32xf32>
    %301 = arith.negf %300 : vector<8x32xf32>
    %302 = math.exp %301 : vector<8x32xf32>
    %cst_117 = arith.constant 1.000000e+00 : f32
    %303 = vector.broadcast %cst_117 : f32 to vector<8x32xf32>
    %304 = arith.addf %303, %302 : vector<8x32xf32>
    %305 = arith.divf %303, %304 : vector<8x32xf32>
    %306 = arith.mulf %300, %305 : vector<8x32xf32>
    %307 = arith.truncf %306 : vector<8x32xf32> to vector<8x32xbf16>
    %c2_118 = arith.constant 2 : index
    %c0_119 = arith.constant 0 : index
    %c0_120 = arith.constant 0 : index
    %308 = vector.load %arg18[%c2_118, %c0_119, %c0_120] : memref<5x32x32xbf16, #tpu.memory_space<vmem>>, vector<1x32x32xbf16>
    %309 = vector.shape_cast %308 : vector<1x32x32xbf16> to vector<32x32xbf16>
    %cst_121 = arith.constant dense<0.000000e+00> : vector<8x32xf32>
    %310 = tpu.matmul %307, %309, %cst_121 {dimension_numbers = #tpu.dot_dimension_numbers<[1], [1], [0], [0], [0, 0, 1, 0], [], []>} : vector<8x32xbf16>, vector<32x32xbf16>, vector<8x32xf32> -> vector<8x32xf32>
    %c2_122 = arith.constant 2 : index
    %c0_123 = arith.constant 0 : index
    %c0_124 = arith.constant 0 : index
    %311 = vector.load %arg19[%c2_122, %c0_123, %c0_124] : memref<5x1x32xf32, #tpu.memory_space<vmem>>, vector<1x1x32xf32>
    %312 = vector.shape_cast %311 : vector<1x1x32xf32> to vector<1x32xf32>
    %313 = vector.broadcast %312 : vector<1x32xf32> to vector<8x32xf32>
    %314 = arith.addf %310, %313 : vector<8x32xf32>
    %315 = vector.extract_strided_slice %232 {offsets = [0, 2], sizes = [8, 1], strides = [1, 1]} : vector<8x4xf32> to vector<8x1xf32>
    %316 = vector.broadcast %315 : vector<8x1xf32> to vector<8x32xf32>
    %317 = arith.mulf %314, %316 : vector<8x32xf32>
    %318 = arith.addf %290, %317 : vector<8x32xf32>
    %c3 = arith.constant 3 : index
    %c0_125 = arith.constant 0 : index
    %c0_126 = arith.constant 0 : index
    %319 = vector.load %arg16[%c3, %c0_125, %c0_126] : memref<5x64x32xbf16, #tpu.memory_space<vmem>>, vector<1x64x32xbf16>
    %320 = vector.shape_cast %319 : vector<1x64x32xbf16> to vector<64x32xbf16>
    %cst_127 = arith.constant dense<0.000000e+00> : vector<8x64xf32>
    %321 = tpu.matmul %233, %320, %cst_127 {dimension_numbers = #tpu.dot_dimension_numbers<[1], [1], [0], [0], [0, 0, 1, 0], [], []>} : vector<8x32xbf16>, vector<64x32xbf16>, vector<8x64xf32> -> vector<8x64xf32>
    %c3_128 = arith.constant 3 : index
    %c0_129 = arith.constant 0 : index
    %c0_130 = arith.constant 0 : index
    %322 = vector.load %arg17[%c3_128, %c0_129, %c0_130] : memref<5x1x64xf32, #tpu.memory_space<vmem>>, vector<1x1x64xf32>
    %323 = vector.shape_cast %322 : vector<1x1x64xf32> to vector<1x64xf32>
    %324 = vector.broadcast %323 : vector<1x64xf32> to vector<8x64xf32>
    %325 = arith.addf %321, %324 : vector<8x64xf32>
    %326 = vector.extract_strided_slice %325 {offsets = [0, 0], sizes = [8, 32], strides = [1, 1]} : vector<8x64xf32> to vector<8x32xf32>
    %327 = vector.extract_strided_slice %325 {offsets = [0, 32], sizes = [8, 32], strides = [1, 1]} : vector<8x64xf32> to vector<8x32xf32>
    %328 = arith.mulf %326, %327 : vector<8x32xf32>
    %329 = arith.negf %328 : vector<8x32xf32>
    %330 = math.exp %329 : vector<8x32xf32>
    %cst_131 = arith.constant 1.000000e+00 : f32
    %331 = vector.broadcast %cst_131 : f32 to vector<8x32xf32>
    %332 = arith.addf %331, %330 : vector<8x32xf32>
    %333 = arith.divf %331, %332 : vector<8x32xf32>
    %334 = arith.mulf %328, %333 : vector<8x32xf32>
    %335 = arith.truncf %334 : vector<8x32xf32> to vector<8x32xbf16>
    %c3_132 = arith.constant 3 : index
    %c0_133 = arith.constant 0 : index
    %c0_134 = arith.constant 0 : index
    %336 = vector.load %arg18[%c3_132, %c0_133, %c0_134] : memref<5x32x32xbf16, #tpu.memory_space<vmem>>, vector<1x32x32xbf16>
    %337 = vector.shape_cast %336 : vector<1x32x32xbf16> to vector<32x32xbf16>
    %cst_135 = arith.constant dense<0.000000e+00> : vector<8x32xf32>
    %338 = tpu.matmul %335, %337, %cst_135 {dimension_numbers = #tpu.dot_dimension_numbers<[1], [1], [0], [0], [0, 0, 1, 0], [], []>} : vector<8x32xbf16>, vector<32x32xbf16>, vector<8x32xf32> -> vector<8x32xf32>
    %c3_136 = arith.constant 3 : index
    %c0_137 = arith.constant 0 : index
    %c0_138 = arith.constant 0 : index
    %339 = vector.load %arg19[%c3_136, %c0_137, %c0_138] : memref<5x1x32xf32, #tpu.memory_space<vmem>>, vector<1x1x32xf32>
    %340 = vector.shape_cast %339 : vector<1x1x32xf32> to vector<1x32xf32>
    %341 = vector.broadcast %340 : vector<1x32xf32> to vector<8x32xf32>
    %342 = arith.addf %338, %341 : vector<8x32xf32>
    %343 = vector.extract_strided_slice %232 {offsets = [0, 3], sizes = [8, 1], strides = [1, 1]} : vector<8x4xf32> to vector<8x1xf32>
    %344 = vector.broadcast %343 : vector<8x1xf32> to vector<8x32xf32>
    %345 = arith.mulf %342, %344 : vector<8x32xf32>
    %346 = arith.addf %318, %345 : vector<8x32xf32>
    %c4 = arith.constant 4 : index
    %c0_139 = arith.constant 0 : index
    %c0_140 = arith.constant 0 : index
    %347 = vector.load %arg16[%c4, %c0_139, %c0_140] : memref<5x64x32xbf16, #tpu.memory_space<vmem>>, vector<1x64x32xbf16>
    %348 = vector.shape_cast %347 : vector<1x64x32xbf16> to vector<64x32xbf16>
    %cst_141 = arith.constant dense<0.000000e+00> : vector<8x64xf32>
    %349 = tpu.matmul %233, %348, %cst_141 {dimension_numbers = #tpu.dot_dimension_numbers<[1], [1], [0], [0], [0, 0, 1, 0], [], []>} : vector<8x32xbf16>, vector<64x32xbf16>, vector<8x64xf32> -> vector<8x64xf32>
    %c4_142 = arith.constant 4 : index
    %c0_143 = arith.constant 0 : index
    %c0_144 = arith.constant 0 : index
    %350 = vector.load %arg17[%c4_142, %c0_143, %c0_144] : memref<5x1x64xf32, #tpu.memory_space<vmem>>, vector<1x1x64xf32>
    %351 = vector.shape_cast %350 : vector<1x1x64xf32> to vector<1x64xf32>
    %352 = vector.broadcast %351 : vector<1x64xf32> to vector<8x64xf32>
    %353 = arith.addf %349, %352 : vector<8x64xf32>
    %354 = vector.extract_strided_slice %353 {offsets = [0, 0], sizes = [8, 32], strides = [1, 1]} : vector<8x64xf32> to vector<8x32xf32>
    %355 = vector.extract_strided_slice %353 {offsets = [0, 32], sizes = [8, 32], strides = [1, 1]} : vector<8x64xf32> to vector<8x32xf32>
    %356 = arith.mulf %354, %355 : vector<8x32xf32>
    %357 = arith.negf %356 : vector<8x32xf32>
    %358 = math.exp %357 : vector<8x32xf32>
    %cst_145 = arith.constant 1.000000e+00 : f32
    %359 = vector.broadcast %cst_145 : f32 to vector<8x32xf32>
    %360 = arith.addf %359, %358 : vector<8x32xf32>
    %361 = arith.divf %359, %360 : vector<8x32xf32>
    %362 = arith.mulf %356, %361 : vector<8x32xf32>
    %363 = arith.truncf %362 : vector<8x32xf32> to vector<8x32xbf16>
    %c4_146 = arith.constant 4 : index
    %c0_147 = arith.constant 0 : index
    %c0_148 = arith.constant 0 : index
    %364 = vector.load %arg18[%c4_146, %c0_147, %c0_148] : memref<5x32x32xbf16, #tpu.memory_space<vmem>>, vector<1x32x32xbf16>
    %365 = vector.shape_cast %364 : vector<1x32x32xbf16> to vector<32x32xbf16>
    %cst_149 = arith.constant dense<0.000000e+00> : vector<8x32xf32>
    %366 = tpu.matmul %363, %365, %cst_149 {dimension_numbers = #tpu.dot_dimension_numbers<[1], [1], [0], [0], [0, 0, 1, 0], [], []>} : vector<8x32xbf16>, vector<32x32xbf16>, vector<8x32xf32> -> vector<8x32xf32>
    %c4_150 = arith.constant 4 : index
    %c0_151 = arith.constant 0 : index
    %c0_152 = arith.constant 0 : index
    %367 = vector.load %arg19[%c4_150, %c0_151, %c0_152] : memref<5x1x32xf32, #tpu.memory_space<vmem>>, vector<1x1x32xf32>
    %368 = vector.shape_cast %367 : vector<1x1x32xf32> to vector<1x32xf32>
    %369 = vector.broadcast %368 : vector<1x32xf32> to vector<8x32xf32>
    %370 = arith.addf %366, %369 : vector<8x32xf32>
    %371 = arith.addf %346, %370 : vector<8x32xf32>
    %372 = arith.addf %178, %371 : vector<8x32xf32>
    %c0_153 = arith.constant 0 : index
    %c0_154 = arith.constant 0 : index
    %c0_155 = arith.constant 0 : index
    %373 = vector.load %arg20[%c0_153, %c0_154, %c0_155] : memref<1x8x32xf32, #tpu.memory_space<vmem>>, vector<1x8x32xf32>
    %374 = vector.shape_cast %373 : vector<1x8x32xf32> to vector<8x32xf32>
    %375 = vector.shape_cast %372 : vector<8x32xf32> to vector<1x8x32xf32>
    tpu.vector_store %arg20[%c0_153, %c0_154, %c0_155], %375 {strides = array<i32>} : memref<1x8x32xf32, #tpu.memory_space<vmem>>, vector<1x8x32xf32>,
    return
  }
  func.func @transform_0(%arg0: i32) -> (i32, i32, i32) {
    %c0_i32 = arith.constant 0 : i32
    %c0_i32_0 = arith.constant 0 : i32
    %c0_i32_1 = arith.constant 0 : i32
    return %arg0, %c0_i32, %c0_i32_0 : i32, i32, i32
  }
  func.func @transform_1(%arg0: i32) -> (i32, i32, i32) {
    %c0_i32 = arith.constant 0 : i32
    %c0_i32_0 = arith.constant 0 : i32
    %c0_i32_1 = arith.constant 0 : i32
    return %arg0, %c0_i32, %c0_i32_0 : i32, i32, i32
  }
  func.func @transform_2(%arg0: i32) -> (i32, i32) {
    %c0_i32 = arith.constant 0 : i32
    %c0_i32_0 = arith.constant 0 : i32
    %c0_i32_1 = arith.constant 0 : i32
    return %c0_i32, %c0_i32_0 : i32, i32
  }
  func.func @transform_3(%arg0: i32) -> (i32, i32) {
    %c0_i32 = arith.constant 0 : i32
    %c0_i32_0 = arith.constant 0 : i32
    %c0_i32_1 = arith.constant 0 : i32
    return %c0_i32, %c0_i32_0 : i32, i32
  }
  func.func @transform_4(%arg0: i32) -> (i32, i32) {
    %c0_i32 = arith.constant 0 : i32
    %c0_i32_0 = arith.constant 0 : i32
    %c0_i32_1 = arith.constant 0 : i32
    return %c0_i32, %c0_i32_0 : i32, i32
  }
  func.func @transform_5(%arg0: i32) -> (i32, i32) {
    %c0_i32 = arith.constant 0 : i32
    %c0_i32_0 = arith.constant 0 : i32
    %c0_i32_1 = arith.constant 0 : i32
    return %c0_i32, %c0_i32_0 : i32, i32
  }
  func.func @transform_6(%arg0: i32) -> (i32, i32) {
    %c0_i32 = arith.constant 0 : i32
    %c0_i32_0 = arith.constant 0 : i32
    %c0_i32_1 = arith.constant 0 : i32
    return %c0_i32, %c0_i32_0 : i32, i32
  }
  func.func @transform_7(%arg0: i32) -> (i32, i32) {
    %c0_i32 = arith.constant 0 : i32
    %c0_i32_0 = arith.constant 0 : i32
    %c0_i32_1 = arith.constant 0 : i32
    return %c0_i32, %c0_i32_0 : i32, i32
  }
  func.func @transform_8(%arg0: i32) -> (i32, i32) {
    %c0_i32 = arith.constant 0 : i32
    %c0_i32_0 = arith.constant 0 : i32
    %c0_i32_1 = arith.constant 0 : i32
    return %c0_i32, %c0_i32_0 : i32, i32
  }
  func.func @transform_9(%arg0: i32) -> (i32, i32) {
    %c0_i32 = arith.constant 0 : i32
    %c0_i32_0 = arith.constant 0 : i32
    %c0_i32_1 = arith.constant 0 : i32
    return %c0_i32, %c0_i32_0 : i32, i32
  }
  func.func @transform_10(%arg0: i32) -> (i32, i32) {
    %c0_i32 = arith.constant 0 : i32
    %c0_i32_0 = arith.constant 0 : i32
    %c0_i32_1 = arith.constant 0 : i32
    return %c0_i32, %c0_i32_0 : i32, i32
  }
  func.func @transform_11(%arg0: i32) -> (i32, i32) {
    %c0_i32 = arith.constant 0 : i32
    %c0_i32_0 = arith.constant 0 : i32
    %c0_i32_1 = arith.constant 0 : i32
    return %c0_i32, %c0_i32_0 : i32, i32
  }
  func.func @transform_12(%arg0: i32) -> (i32, i32) {
    %c0_i32 = arith.constant 0 : i32
    %c0_i32_0 = arith.constant 0 : i32
    %c0_i32_1 = arith.constant 0 : i32
    return %c0_i32, %c0_i32_0 : i32, i32
  }
  func.func @transform_13(%arg0: i32) -> (i32, i32) {
    %c0_i32 = arith.constant 0 : i32
    %c0_i32_0 = arith.constant 0 : i32
    %c0_i32_1 = arith.constant 0 : i32
    return %c0_i32, %c0_i32_0 : i32, i32
  }
  func.func @transform_14(%arg0: i32) -> (i32, i32) {
    %c0_i32 = arith.constant 0 : i32
    %c0_i32_0 = arith.constant 0 : i32
    %c0_i32_1 = arith.constant 0 : i32
    return %c0_i32, %c0_i32_0 : i32, i32
  }
  func.func @transform_15(%arg0: i32) -> (i32, i32, i32) {
    %c0_i32 = arith.constant 0 : i32
    %c0_i32_0 = arith.constant 0 : i32
    %c0_i32_1 = arith.constant 0 : i32
    %c0_i32_2 = arith.constant 0 : i32
    return %c0_i32, %c0_i32_0, %c0_i32_1 : i32, i32, i32
  }
  func.func @transform_16(%arg0: i32) -> (i32, i32, i32) {
    %c0_i32 = arith.constant 0 : i32
    %c0_i32_0 = arith.constant 0 : i32
    %c0_i32_1 = arith.constant 0 : i32
    %c0_i32_2 = arith.constant 0 : i32
    return %c0_i32, %c0_i32_0, %c0_i32_1 : i32, i32, i32
  }
  func.func @transform_17(%arg0: i32) -> (i32, i32, i32) {
    %c0_i32 = arith.constant 0 : i32
    %c0_i32_0 = arith.constant 0 : i32
    %c0_i32_1 = arith.constant 0 : i32
    %c0_i32_2 = arith.constant 0 : i32
    return %c0_i32, %c0_i32_0, %c0_i32_1 : i32, i32, i32
  }
  func.func @transform_18(%arg0: i32) -> (i32, i32, i32) {
    %c0_i32 = arith.constant 0 : i32
    %c0_i32_0 = arith.constant 0 : i32
    %c0_i32_1 = arith.constant 0 : i32
    %c0_i32_2 = arith.constant 0 : i32
    return %c0_i32, %c0_i32_0, %c0_i32_1 : i32, i32, i32
  }
  func.func @transform_19(%arg0: i32) -> (i32, i32, i32) {
    %c0_i32 = arith.constant 0 : i32
    %c0_i32_0 = arith.constant 0 : i32
    %c0_i32_1 = arith.constant 0 : i32
    return %arg0, %c0_i32, %c0_i32_0 : i32, i32, i32
  }
}

</mosaic_0001>

<bundles_post_ra>
// kernel: tile.11
= control target key start
LH: loop header
LB: loop body
LE: loop exit
PB: predicated region body
PF: predicated region fallthrough
CT: control target
= control target key end

     0   :  { %vm43_vm0 = vcmask 1047556   ;;  %vm45_vm1 = vcmask 64512   ;;  %vm55_vm2 = vcmask 130112   ;;  %s112_s0 = inlined_call_operand.vmem [shape: f32[8,2,8], index: 0, kind: input, shape index: {}]   ;;  %s113_s1 = inlined_call_operand.vmem [shape: f32[8,16], index: 1, kind: output, shape index: {}]  }
   0x1   :  { %v63_v0 = vld [vmem:[%s112_s0 + $0xe] sm:$0x3]  ;;  %v64_v1 = vld [vmem:[%s112_s0 + $0xc] sm:$0x3]  ;;  %v65_v2 = vld [vmem:[%s112_s0 + $0xa] sm:$0x3] }
   0x2   :  { %9 = vst [vmem:[#allocation0 + $0x38] sm:$0x3] %v63_v0  ;;  %14 = vst [vmem:[#allocation0 + $0x30] sm:$0x3] %v64_v1  ;;  %v66_v3 = vld [vmem:[%s112_s0 + $0x8] sm:$0x3] }
   0x3   :  { %19 = vst [vmem:[#allocation0 + $0x28] sm:$0x3] %v65_v2  ;;  %v67_v4 = vld [vmem:[%s112_s0 + $0x6] sm:$0x3]  ;;  %v68_v5 = vld [vmem:[%s112_s0 + $0x4] sm:$0x3] }
   0x4   :  { %24 = vst [vmem:[#allocation0 + $0x20] sm:$0x3] %v66_v3  ;;  %29 = vst [vmem:[#allocation0 + $0x18] sm:$0x3] %v67_v4  ;;  %v69_v6 = vld [vmem:[%s112_s0 + $0x2] sm:$0x3] }
   0x5   :  { %34 = vst [vmem:[#allocation0 + $0x10] sm:$0x3] %v68_v5  ;;  %v39_v7 = vld [vmem:[%s112_s0] sm:$0x3]  ;;  %38 = vst [vmem:[#allocation0 + $0x8] sm:$0x3] %v69_v6 }
   0x6   :  { %40 = vst [vmem:[#allocation0] sm:$0x3] %v39_v7  ;;  %s71_s0 = smov 8  }
   0xb   :  { %v42_v8 = vld [vmem:[#allocation0] ss:$8 sm:$0xf0]   ;;  %v50_v9 = vld [vmem:[#allocation0 + $0x1] ss:$8 sm:$0xf0]  }
   0xd   :  { %v41_v10 = vld [vmem:[#allocation0] ss:$8 sm:$0xf]   ;;  %v48_v11 = vld [vmem:[#allocation0 + $0x1] ss:$8 sm:$0xf]  }
   0xe   :  { %v44_v12 = vsel %vm43_vm0, %v42_v8, %v41_v10  ;;  %v52_v13 = vsel %vm43_vm0, %v50_v9, %v48_v11 }
   0xf   :  { %53 = vrot.lane.b32.xlu0 %v52_v13, %s71_s0  ;;  %46 = vst.msk [vmem:[%s113_s1] sm:$0xff] %vm45_vm1, %v44_v12  }
  0x81   :  { %v54_v14 = vpop.permute.xlu0 %53  }
  0x82   :  { %56 = vst.msk [vmem:[%s113_s1] sm:$0xff] %vm55_vm2, %v54_v14  }

// kernel: _lambda_.1
= control target key start
LH: loop header
LB: loop body
LE: loop exit
PB: predicated region body
PF: predicated region fallthrough
CT: control target
= control target key end

     0   :  { %s4067_s0 = inlined_call_operand.vmem [shape: f32[2,8,32], index: 0, kind: input, shape index: {}]   ;;  %s4068_s1 = inlined_call_operand.vmem [shape: f32[2,8,32], index: 1, kind: input, shape index: {}]   ;;  %s4069_s2 = inlined_call_operand.vmem [shape: f32[8,16], index: 2, kind: input, shape index: {}]   ;;  %s4070_s3 = inlined_call_operand.vmem [shape: f32[8,16], index: 3, kind: input, shape index: {}]   ;;  %s4071_s4 = inlined_call_operand.vmem [shape: f32[6,32], index: 4, kind: input, shape index: {}]   ;;  %s4072_s5 = inlined_call_operand.vmem [shape: bf16[32,32], index: 5, kind: input, shape index: {}]   ;;  %s4073_s6 = inlined_call_operand.vmem [shape: bf16[32,32], index: 6, kind: input, shape index: {}]   ;;  %s4074_s7 = inlined_call_operand.vmem [shape: bf16[48,32], index: 7, kind: input, shape index: {}]   ;;  %s4075_s8 = inlined_call_operand.vmem [shape: f32[1,16], index: 8, kind: input, shape index: {}]   ;;  %s4076_s9 = inlined_call_operand.vmem [shape: bf16[64,16], index: 9, kind: input, shape index: {}]   ;;  %s4077_s10 = inlined_call_operand.vmem [shape: f32[1,16], index: 10, kind: input, shape index: {}]   ;;  %s4078_s11 = inlined_call_operand.vmem [shape: bf16[64,16], index: 11, kind: input, shape index: {}]   ;;  %s4079_s12 = inlined_call_operand.vmem [shape: bf16[32,32], index: 12, kind: input, shape index: {}]   ;;  %s4080_s13 = inlined_call_operand.vmem [shape: f32[4,32], index: 13, kind: input, shape index: {}]   ;;  %s4081_s14 = inlined_call_operand.vmem [shape: f32[1,4], index: 14, kind: input, shape index: {}]   ;;  %s4082_s15 = inlined_call_operand.vmem [shape: bf16[5,64,32], index: 15, kind: input, shape index: {}]   ;;  %s4083_s16 = inlined_call_operand.vmem [shape: f32[5,1,64], index: 16, kind: input, shape index: {}]   ;;  %s4084_s17 = inlined_call_operand.vmem [shape: bf16[5,32,32], index: 17, kind: input, shape index: {}]   ;;  %s4085_s18 = inlined_call_operand.vmem [shape: f32[5,1,32], index: 18, kind: input, shape index: {}]   ;;  %s4086_s19 = inlined_call_operand.hbm [shape: f32[2,8,32], index: 19, kind: output, shape index: {}]  }
   0x1   :  { %4092 = sst [smem:[#allocation10_spill]] %s4067_s0 }
   0x2   :  { %4093 = sst [smem:[#allocation11_spill]] %s4068_s1 }
   0x3   :  { %4094 = sst [smem:[#allocation12_spill]] %s4069_s2 }
   0x4   :  { %4095 = sst [smem:[#allocation13_spill]] %s4070_s3 }
   0x5   :  { %4096 = sst [smem:[#allocation14_spill]] %s4071_s4 }
   0x6   :  { %24 = vsyncpa [#allocation3], 0 }
   0x7   :  { %26 = vsyncpa [#allocation3 + $0x1], 0  ;;  %s3471_s0 = smov 0   ;;  %s3473_s30 = smov 0  }
   0x8   :  { %s3475_s20 = smov 0   ;;  %s3477_s21 = smov 0  }
   0x9 LB: > { %4097 = sst [smem:[#allocation5_spill]] %s3341_s0  ;;  %s3492_s1 = sadd.s32 4294967295, %s3353_s21   ;;  %s3353_s21 = sphi %s3477_s21, %s4111_s21   ;;  %s3349_s20 = sphi %s3475_s20, %s4113_s20   ;;  %s3345_s30 = sphi %s3473_s30, %s4115_s30   ;;  %s3341_s0 = sphi %s3471_s0, %s4114_s0  }
   0xa   : > { %4098 = sst [smem:[#allocation6_spill]] %s3349_s20  ;;  %s2699_s22 = sadd.s32 4294967294, %s3353_s21  }
   0xb   : > { %s3496_s2 = sadd.s32 1, %s3353_s21   ;;  %s448_s23 = sadd.s32 1, %s3349_s20 }
   0xc   : > { %4099 = sst [smem:[#allocation7_spill]] %s3496_s2  ;;  %s445_s24 = ssub.s32 %s3353_s21, %s3496_s2 }
   0xd   : > { %p458_p0 = scmp.ne.s32.totalorder %s3349_s20, %s3345_s30  ;;  %p446_p1 = scmp.eq.s32.totalorder %s445_s24, 0 }
   0xe   : > { %p459_p2 = scmp.eq.s32.totalorder %s3492_s1, 1  ;;  %p464_p3 = scmp.ne.s32.totalorder %s3345_s30, %s3341_s0 }
   0xf   : > { %p465_p4 = scmp.eq.s32.totalorder %s2699_s22, 1  ;;  %p2702_p7 = scmp.ge.s32.totalorder %s3353_s21, 1 }
  0x10   : > { %s3507_s25 = scalar_select %p446_p1, %s3349_s20, %s448_s23  }
  0x11   : > { %p3509_p5 = por %p459_p2, %p458_p0  ;;  %p3513_p6 = por %p465_p4, %p464_p3 }
  0x12   : > { %4100 = sst [smem:[#allocation8_spill]] %s3507_s25  ;;  %p548_p8 = scmp.lt.s32.totalorder %s3353_s21, 3 }
  0x13   : > { %s4102_s26 = scalar_select %p3513_p6, 1, 0 }
  0x14   : > { %p549_p9 = pnand %p2702_p7, %p548_p8 }
  0x15   : > { %4103 = sst [smem:[#allocation9_spill]] %s4102_s26  ;;  %p607_p10 = scmp.lt.s32.totalorder (!%p549_p9), %s3492_s1, 1 }
  0x16   : > { %552 = sbr.rel (%p549_p9) target bundleno = 5312 (0x14c0), region = 96  ;;  %s4104_s23 = sld [smem:[#allocation10_spill]] (!%p549_p9) }
  0x17   : > { %s4105_s2 = sld [smem:[#allocation11_spill]] (!%p549_p9)  ;;  %s3362_s25 = smov (!%p549_p9), 120  }
  0x18   : > { %s4106_s4 = sld [smem:[#allocation14_spill]] (!%p549_p9)  ;;  %s3363_s26 = smov (!%p549_p9), 112  }
  0x19   : > { %s4108_s20 = sld [smem:[#allocation12_spill]] (!%p549_p9)  ;;  %s3364_s29 = smov (!%p549_p9), 88  }
  0x1a   : > { %s3365_s22 = smov (!%p549_p9), 80  }
  0x1b   : > { %s608_s27 = scalar_select %p607_p10, %s3492_s1, 1  ;;  %vm619_vm0 = vcmask 261120   ;;  %v3202_v6 = vld [vmem:[%s4072_s5 + $0x8] sm:$0xff]   ;;  %v3355_v7 = vmov 0.0   ;;  %vm3356_vm1 = vmmov 0   ;;  %v3204_v11 = vld [vmem:[%s4072_s5] sm:$0xff]   ;;  %v628_v20 = vlaneseq }
  0x1c   : > { %2944 = vmatprep.subr.bf16.mxu1 %v3355_v7  ;;  %v733_v8 = vsel %vm619_vm0, %v3202_v6, 0  ;;  %2936 = vmatprep.subr.bf16.mxu0 %v3355_v7  ;;  %v3203_v9 = vld [vmem:[%s4073_s6 + $0x8] sm:$0xff]   ;;  %v3205_v12 = vld [vmem:[%s4073_s6] sm:$0xff]   ;;  %v730_v13 = vsel %vm619_vm0, %v3204_v11, 0  ;;  %v3206_v50 = vld [vmem:[%s4074_s7 + $0x10] sm:$0xff]   ;;  %vm869_vm2 = vcmask 130048  }
  0x1d   : > { %s2704_s28 = sshll.u32 %s608_s27, 3  ;;  %2945 = vmatpush3.bf16.xpose.msra.mxu1 %v733_v8  ;;  %2948 = vmatprep.mubr.msk.bf16.mxu1 %vm3356_vm1, %v3355_v7  ;;  %v674_v10 = vsel %vm619_vm0, %v3203_v9, 0  ;;  %v671_v14 = vsel %vm619_vm0, %v3205_v12, 0  ;;  %v3556_v22 = vshrl.u32 %v628_v20, 7  ;;  %v825_v51 = vsel %vm619_vm0, %v3206_v50, 0  ;;  %v3207_v52 = vld [vmem:[%s4074_s7 + $0x8] sm:$0xff]  }
  0x1e   : > { %s610_s24 = scalar_lea.vmem %s4104_s23, %s2704_s28  ;;  %s614_s0 = scalar_lea.vmem %s4105_s2, %s2704_s28  ;;  %2946 = vmatprep.subr.bf16.mxu1 %v3355_v7  ;;  %2940 = vmatprep.mubr.msk.bf16.mxu0 %vm3356_vm1, %v3355_v7  ;;  %v3562_v24 = vld [vmem:[%s4106_s4] sm:$0x3f]  ;;  %v822_v53 = vsel %vm619_vm0, %v3207_v52, 0  ;;  %v3210_v12 = vld [vmem:[%s4076_s9 + $0x10] sm:$0xff]   ;;  %vm1126_vm3 = vcmask 64512   ;;  %vm1239_vm5 = vcmask 1043456  }
  0x1f   : > { %v617_v0 = vld [vmem:[%s610_s24] sm:$0xff]  ;;  %2937 = vmatpush3.bf16.xpose.msra.mxu0 %v674_v10  ;;  %v630_v23 = vsub.s32 0, %v3556_v22  ;;  %v645_v26 = vsub.s32 1, %v3556_v22  ;;  %v777_v36 = vsub.s32 4, %v3556_v22  ;;  %v790_v59 = vsub.s32 2, %v3556_v22  ;;  %s3357_s28 = smov 96  }
  0x20   : > { %v634_v1 = vld [vmem:[%s614_s0] sm:$0xff]  ;;  %v618_v2 = vmul.f32 %v617_v0, %v617_v0  ;;  %2938 = vmatprep.subr.bf16.mxu0 %v3355_v7  ;;  %s4107_s23 = sld [smem:[#allocation13_spill]]  ;;  %s3358_s24 = smov 24   ;;  %vm1651_vm6 = vcmask 31744  }
  0x21   : > { %v635_v3 = vmul.f32 %v634_v1, %v634_v1  ;;  %v631_v25 = vrot.slane %v3562_v24, %v630_v23  ;;  %v646_v30 = vrot.slane %v3562_v24, %v645_v26  ;;  %v778_v39 = vrot.slane %v3562_v24, %v777_v36  ;;  %v3208_v54 = vld [vmem:[%s4074_s7] sm:$0xff]   ;;  %s3359_s2 = smov 16   ;;  %v3215_v36 = vld [vmem:[%s4078_s11 + $0x8] sm:$0xff]   ;;  %s604_s0 = sand.u32 1, %s3345_s30  }
  0x22   : > { %v620_v4 = vsel %vm619_vm0, %v618_v2, 0.0  ;;  %v819_v55 = vsel %vm619_vm0, %v3208_v54, 0  ;;  %v791_v60 = vrot.slane %v3562_v24, %v790_v59  ;;  %v969_v11 = vld [vmem:[%s4108_s20] sm:$0xff] }
  0x23   : > { %v636_v5 = vsel %vm619_vm0, %v635_v3, 0.0  ;;  %621 = vadd.xlane.f32.xlu0 %v620_v4 }
  0x25   : > { %2947 = vmatpush3.bf16.xpose.msra.mxu1 %v730_v13  ;;  %v924_v13 = vsel %vm869_vm2, %v3210_v12, 0 }
  0x26   : > { %2962 = vmatprep.subr.bf16.mxu1 %v3355_v7  ;;  %v3615_v9 = vld [vmem:[%s4107_s23] sm:$0xff]  ;;  %s3360_s23 = smov 32  }
  0x27   : > { %637 = vadd.xlane.f32.xlu0 %v636_v5  ;;  %2939 = vmatpush3.bf16.xpose.msra.mxu0 %v671_v14  ;;  %v3211_v14 = vld [vmem:[%s4076_s9 + $0x8] sm:$0xff]  }
  0x28   : > { %2952 = vmatprep.subr.bf16.mxu0 %v3355_v7 }
  0xac   : > { %v622_v15 = vpop.xlane.xlu0 %621 }
  0xad   : > { %v624_v16 = vmul.f32 0.03125, %v622_v15  ;;  %v921_v15 = vsel %vm869_vm2, %v3211_v14, 0 }
  0xaf   : > { %v625_v17 = vadd.f32 1.1920929e-07, %v624_v16  ;;  %v3212_v16 = vld [vmem:[%s4076_s9] sm:$0xff]  }
  0xb0   : > { %v638_v18 = vpop.xlane.xlu0 %637 }
  0xb1   : > { %3249 = vrsqrt.f32 %v625_v17  ;;  %v639_v19 = vmul.f32 0.03125, %v638_v18  ;;  %v918_v17 = vsel %vm869_vm2, %v3212_v16, 0 }
  0xb3   : > { %v640_v21 = vadd.f32 1.1920929e-07, %v639_v19 }
  0xb5   : > { %3251 = vrsqrt.f32 %v640_v21  ;;  %v2722_v21 = vld [vmem:[%s4077_s10] ss:$0 sm:$0xff] }
  0xbe   : > { %v3250_v27 = vpop.eup %3249 }
  0xbf   : > { %v627_v28 = vmul.f32 %v3250_v27, %v617_v0 }
  0xc1   : > { %v632_v29 = vmul.f32 %v631_v25, %v627_v28  ;;  %v2716_v28 = vld [vmem:[%s4075_s8] ss:$0 sm:$0xff] }
  0xc2   : > { %v3252_v31 = vpop.eup %3251 }
  0xc3   : > { %v633_v32 = vpack.c.bf16 %v632_v29, %v632_v29  ;;  %v642_v33 = vmul.f32 %v3252_v31, %v634_v1  ;;  %v3209_v1 = vld [vmem:[%s4076_s9 + $0x18] sm:$0xff]  }
  0xc4   : > { %v927_v3 = vsel %vm869_vm2, %v3209_v1, 0 }
  0xc5   : > { %2949 = vmatmul.mubr.msk.bf16.vlgmr.msra.gmra.mxu1 %vm619_vm0, %v633_v32  ;;  %v647_v34 = vmul.f32 %v646_v30, %v642_v33  ;;  %v3213_v32 = vld [vmem:[%s4078_s11 + $0x18] sm:$0xff]  }
  0xc6   : > { %2970 = vmatprep.mubr.msk.bf16.mxu1 %vm3356_vm1, %v3355_v7  ;;  %2963 = vmatpush3.bf16.xpose.msra.mxu1 %v927_v3  ;;  %v1065_v33 = vsel %vm869_vm2, %v3213_v32, 0 }
  0xc7   : > { %v648_v35 = vpack.c.bf16 %v647_v34, %v647_v34  ;;  %2964 = vmatprep.subr.bf16.mxu1 %v3355_v7  ;;  %v3214_v34 = vld [vmem:[%s4078_s11 + $0x10] sm:$0xff]  }
  0xc9   : > { %2941 = vmatmul.mubr.msk.bf16.vlgmr.msra.gmra.mxu0 %vm619_vm0, %v648_v35  ;;  %v1062_v35 = vsel %vm869_vm2, %v3214_v34, 0 }
  0xca   : > { %2958 = vmatprep.mubr.msk.bf16.mxu0 %vm3356_vm1, %v3355_v7  ;;  %2953 = vmatpush3.bf16.xpose.msra.mxu0 %v825_v51 }
  0xcb   : > { %2954 = vmatprep.subr.bf16.mxu0 %v3355_v7 }
  0xce   : > { %2965 = vmatpush3.bf16.xpose.msra.mxu1 %v924_v13 }
  0xcf   : > { %2966 = vmatprep.subr.bf16.mxu1 %v3355_v7 }
  0xd2   : > { %2955 = vmatpush3.bf16.xpose.msra.mxu0 %v822_v53 }
  0xd3   : > { %2956 = vmatprep.subr.bf16.mxu0 %v3355_v7 }
  0xd6   : > { %2967 = vmatpush3.bf16.xpose.msra.mxu1 %v921_v15 }
  0xd7   : > { %2968 = vmatprep.subr.bf16.mxu1 %v3355_v7 }
  0xda   : > { %2957 = vmatpush3.bf16.xpose.msra.mxu0 %v819_v55 }
  0xdb   : > { %2974 = vmatprep.subr.bf16.mxu0 %v3355_v7 }
  0xde   : > { %2969 = vmatpush3.bf16.xpose.msra.mxu1 %v918_v17 }
  0xdf   : > { %2986 = vmatprep.subr.bf16.mxu1 %v3355_v7 }
 0x185   : > { %v769_v37 = vpop.f32.mrf.mxu1 }
 0x187   : > { %v2950_v38 = vpop.f32.mrf.mxu1 }
 0x188   : > { %v3216_v38 = vld [vmem:[%s4078_s11] sm:$0xff]  }
 0x189   : > { %v710_v40 = vpop.f32.mrf.mxu0  ;;  %v772_v41 = vpop.f32.mrf.mxu1 }
 0x18a   : > { %v770_v42 = vadd.f32 %v769_v37, %v710_v40  ;;  %v1059_v37 = vsel %vm869_vm2, %v3215_v36, 0  ;;  %v1056_v41 = vsel %vm869_vm2, %v3216_v38, 0 }
 0x18b   : > { %v2942_v43 = vpop.f32.mrf.mxu0  ;;  %v2951_v44 = vpop.f32.mrf.mxu1 }
 0x18c   : > { %v3575_v45 = vadd.f32 %v778_v39, %v770_v42 }
 0x18d   : > { %v713_v46 = vpop.f32.mrf.mxu0 }
 0x18e   : > { %v780_v47 = vmul.f32 %v3575_v45, %v3575_v45 }
 0x18f   : > { %v2943_v48 = vpop.f32.mrf.mxu0 }
 0x190   : > { %v781_v49 = vsel %vm619_vm0, %v780_v47, 0.0 }
 0x191   : > { %782 = vadd.xlane.f32.xlu1 %v781_v49 }
 0x21a   : > { %v783_v56 = vpop.xlane.xlu1 %782 }
 0x21b   : > { %v784_v57 = vmul.f32 0.03125, %v783_v56 }
 0x21d   : > { %v785_v58 = vadd.f32 1.1920929e-07, %v784_v57 }
 0x21f   : > { %3253 = vrsqrt.f32 %v785_v58 }
 0x22c   : > { %v3254_v61 = vpop.eup %3253 }
 0x22d   : > { %v787_v62 = vmul.f32 %v3254_v61, %v3575_v45 }
 0x22f   : > { %v792_v63 = vmul.f32 %v791_v60, %v787_v62 }
 0x231   : > { %v793_v0 = vpack.c.bf16 %v792_v63, %v792_v63 }
 0x233   : > { %2959 = vmatmul.mubr.msk.bf16.vlgmr.msra.gmra.mxu0 %vm619_vm0, %v793_v0 }
 0x234   : > { %2982 = vmatprep.mubr.msk.bf16.mxu0 %vm3356_vm1, %v3355_v7  ;;  %2975 = vmatpush3.bf16.xpose.msra.mxu0 %v1065_v33 }
 0x235   : > { %2976 = vmatprep.subr.bf16.mxu0 %v3355_v7 }
 0x23c   : > { %2977 = vmatpush3.bf16.xpose.msra.mxu0 %v1062_v35 }
 0x23d   : > { %2978 = vmatprep.subr.bf16.mxu0 %v3355_v7 }
 0x244   : > { %2979 = vmatpush3.bf16.xpose.msra.mxu0 %v1059_v37 }
 0x245   : > { %2980 = vmatprep.subr.bf16.mxu0 %v3355_v7 }
 0x24c   : > { %2981 = vmatpush3.bf16.xpose.msra.mxu0 %v1056_v41 }
 0x24d   : > { %3016 = vmatprep.subr.bf16.mxu0 %v3355_v7 }
 0x2f3   : > { %v3604_v2 = vpop.f32.mrf.mxu0 }
 0x2f4   : > { %v868_v4 = vmul.f32 %v3604_v2, %v3604_v2 }
 0x2f5   : > { %v2960_v5 = vpop.f32.mrf.mxu0 }
 0x2f6   : > { %1001 = vrot.lane.b32.xlu0 %v868_v4, %s3357_s28  ;;  %v870_v6 = vsel %vm869_vm2, %v868_v4, 0.0 }
 0x2f7   : > { %871 = vadd.xlane.f32.xlu1 %v870_v6  ;;  %v864_v8 = vpop.f32.mrf.mxu0 }
 0x2f9   : > { %v2961_v10 = vpop.f32.mrf.mxu0 }
 0x2fa   : > { %990 = vrot.lane.b32.xlu0 %v3615_v9, %s3358_s24 }
 0x2fe   : > { %986 = vrot.lane.b32.xlu0 %v969_v11, %s3359_s2  ;;  %s3361_s2 = smov 48  }
 0x302   : > { %972 = vrot.lane.b32.xlu0 %v969_v11, %s3360_s23 }
 0x368   : > { %v1002_v18 = vpop.permute.xlu0 %1001 }
 0x369   : > { %v1004_v19 = vsel %vm869_vm2, %v1002_v18, 0.0 }
 0x36a   : > { %1005 = vadd.xlane.f32.xlu1 %v1004_v19  ;;  %v3692_v19 = vand.u32 127, %v628_v20 }
 0x36c   : > { %v991_v49 = vpop.permute.xlu0 %990  ;;  %vm1111_vm4 = vcmp.le.s32.totalorder %v3692_v19, %v3556_v22 }
 0x36d   : > { %v993_v50 = vmul.f32 %v991_v49, %v3604_v2 }
 0x370   : > { %v987_v56 = vpop.permute.xlu0 %986 }
 0x371   : > { %v989_v59 = vmul.f32 %v987_v56, %v3604_v2 }
 0x374   : > { %v973_v63 = vpop.permute.xlu0 %972 }
 0x37b   : > { %1016 = vrot.lane.b32.xlu1 %v2722_v21, %s3360_s23 }
 0x380   : > { %v872_v23 = vpop.xlane.xlu1 %871 }
 0x381   : > { %v874_v25 = vmul.f32 0.0625, %v872_v23 }
 0x383   : > { %v875_v26 = vadd.f32 1.1920929e-07, %v874_v25 }
 0x385   : > { %3255 = vrsqrt.f32 %v875_v26 }
 0x392   : > { %v3256_v27 = vpop.eup %3255 }
 0x393   : > { %v877_v29 = vmul.f32 %v3256_v27, %v3604_v2 }
 0x395   : > { %v884_v30 = vmul.f32 %v2716_v28, %v877_v29 }
 0x397   : > { %v885_v31 = vpack.c.bf16 %v884_v30, %v884_v30 }
 0x399   : > { %2971 = vmatmul.mubr.msk.bf16.vlgmr.msra.gmra.mxu1 %vm869_vm2, %v885_v31 }
 0x39a   : > { %2988 = vmatprep.mubr.msk.bf16.mxu1 %vm3356_vm1, %v3355_v7 }
 0x3f3   : > { %v1006_v39 = vpop.xlane.xlu1 %1005 }
 0x3f4   : > { %v1007_v40 = vmul.f32 0.0625, %v1006_v39 }
 0x3f6   : > { %v1008_v42 = vadd.f32 1.1920929e-07, %v1007_v40 }
 0x3f7   : > { %v1017_v44 = vpop.permute.xlu1 %1016 }
 0x3f8   : > { %3257 = vrsqrt.f32 %v1008_v42 }
 0x405   : > { %v3258_v43 = vpop.eup %3257 }
 0x406   : > { %v1010_v46 = vmul.f32 %v3258_v43, %v3604_v2 }
 0x408   : > { %v1019_v47 = vmul.f32 %v1017_v44, %v1010_v46 }
 0x40a   : > { %v1020_v48 = vpack.c.bf16 %v1019_v47, %v1019_v47 }
 0x40c   : > { %1030 = vrot.lane.b32.xlu1 %v1020_v48, %s3357_s28 }
 0x410   : > { %977 = vrot.lane.b32.xlu1 %v3615_v9, %s3361_s2  ;;  %s2615_s2 = scalar_lea.sflag [#allocation3], %s604_s0 }
 0x414   : > { %995 = vrot.lane.b32.xlu1 %v993_v50, %s3362_s25  ;;  %s2703_s25 = sshll.u32 %s604_s0, 3 }
 0x459   : > { %v963_v51 = vpop.f32.mrf.mxu1 }
 0x45a   : > { %v975_v0 = vmul.f32 %v973_v63, %v963_v51  ;;  %v1117_v14 = vpack.c.bf16 %v963_v51, %v963_v51 }
 0x45b   : > { %v2972_v52 = vpop.f32.mrf.mxu1 }
 0x45d   : > { %v966_v53 = vpop.f32.mrf.mxu1 }
 0x45f   : > { %v2973_v54 = vpop.f32.mrf.mxu1 }
 0x47e   : > { %v1031_v55 = vpop.permute.xlu1 %1030 }
 0x47f   : > { %2983 = vmatmul.mubr.msk.bf16.vlgmr.msra.gmra.mxu0 %vm869_vm2, %v1031_v55 }
 0x480   : > { %3018 = vmatprep.mubr.msk.bf16.mxu0 %vm3356_vm1, %v3355_v7 }
 0x482   : > { %v978_v57 = vpop.permute.xlu1 %977 }
 0x483   : > { %v980_v58 = vmul.f32 %v978_v57, %v963_v51 }
 0x485   : > { %982 = vrot.lane.b32.xlu1 %v980_v58, %s3363_s26 }
 0x486   : > { %v996_v60 = vpop.permute.xlu1 %995 }
 0x487   : > { %v998_v61 = vadd.f32 %v996_v60, %v989_v59 }
 0x489   : > { %v1112_v62 = vpack.c.bf16 %v998_v61, %v998_v61 }
 0x48b   : > { %1124 = vrot.lane.b32.xlu0 %v1112_v62, %s3363_s26 }
 0x4f7   : > { %v983_v1 = vpop.permute.xlu1 %982 }
 0x4f8   : > { %v985_v3 = vadd.f32 %v983_v1, %v975_v0 }
 0x4fa   : > { %v1118_v4 = vpack.c.bf16 %v985_v3, %v985_v3 }
 0x4fc   : > { %1121 = vrot.lane.b32.xlu1 %v1118_v4, %s3357_s28 }
 0x4fd   : > { %v1125_v5 = vpop.permute.xlu0 %1124 }
 0x4fe   : > { %v1131_v6 = vsel %vm1126_vm3, %v1125_v5, 0 }
 0x4ff   : > { %2987 = vmatpush3.bf16.xpose.msra.mxu1 %v1131_v6 }
 0x500   : > { %2992 = vmatprep.subr.bf16.mxu1 %v3355_v7 }
 0x53f   : > { %v1101_v2 = vpop.f32.mrf.mxu0 }
 0x540   : > { %v3680_v11 = vpack.c.bf16 %v1101_v2, %v1101_v2  ;;  %v3218_v2 = vld [vmem:[%s4079_s12] sm:$0xff]  }
 0x541   : > { %v2984_v8 = vpop.f32.mrf.mxu0 }
 0x542   : > { %v1177_v13 = vsel %vm869_vm2, %v3680_v11, 0 }
 0x543   : > { %v1104_v9 = vpop.f32.mrf.mxu0 }
 0x545   : > { %v2985_v10 = vpop.f32.mrf.mxu0 }
 0x56e   : > { %v1122_v12 = vpop.permute.xlu1 %1121 }
 0x56f   : > { %2989 = vmatmul.mubr.msk.bf16.vlgmr.msra.gmra.mxu1 %vm1126_vm3, %v1122_v12 }
 0x570   : > { %2993 = vmatpush3.bf16.xpose.msra.mxu1 %v1177_v13  ;;  %2994 = vmatprep.mubr.msk.bf16.mxu1 %vm3356_vm1, %v3355_v7 }
 0x571   : > { %2998 = vmatprep.subr.bf16.mxu1 %v3355_v7 }
 0x577   : > { %2995 = vmatmul.mubr.msk.bf16.vlgmr.msra.gmra.mxu1 %vm869_vm2, %v1117_v14 }
 0x578   : > { %3000 = vmatprep.mubr.msk.bf16.mxu1 %vm3356_vm1, %v3355_v7 }
 0x62f   : > { %v1167_v15 = vpop.f32.mrf.mxu1 }
 0x631   : > { %v2990_v16 = vpop.f32.mrf.mxu1 }
 0x633   : > { %v1170_v17 = vpop.f32.mrf.mxu1 }
 0x634   : > { %v1510_v17 = vsel %vm869_vm2, %v3218_v2, 0 }
 0x635   : > { %v2991_v18 = vpop.f32.mrf.mxu1 }
 0x637   : > { %v1213_v21 = vpop.f32.mrf.mxu1 }
 0x638   : > { %v1214_v23 = vadd.f32 %v1213_v21, %v1167_v15 }
 0x639   : > { %v2996_v25 = vpop.f32.mrf.mxu1 }
 0x63a   : > { %v1219_v26 = vmul.f32 0.20412415, %v1214_v23 }
 0x63b   : > { %v1216_v27 = vpop.f32.mrf.mxu1 }
 0x63c   : > { %v1220_v28 = vsel %vm1111_vm4, %v1219_v26, -1e+30 }
 0x63d   : > { %v2997_v29 = vpop.f32.mrf.mxu1  ;;  %v1221_v30 = vsel %vm1126_vm3, %v1220_v28, -inf }
 0x63e   : > { %1222 = vmax.xlane.f32.xlu0 %v1221_v30 }
 0x654   : > { %1234 = vrot.lane.b32.xlu0 %v3680_v11, %s3357_s28 }
 0x658   : > { %1332 = vrot.lane.b32.xlu0 %v3680_v11, %s3363_s26 }
 0x6c7   : > { %v1223_v20 = vpop.xlane.xlu0 %1222 }
 0x6c8   : > { %v1224_v31 = vsub.f32 %v1220_v28, %v1223_v20 }
 0x6ca   : > { %v1225_v32 = vmul.f32 1.442695, %v1224_v31  ;;  %v3219_v31 = vld [vmem:[%s4082_s15 + $0x18] sm:$0xff]  }
 0x6cb   : > { %v1235_v33 = vpop.permute.xlu0 %1234 }
 0x6cc   : > { %3259 = vpow2.f32 %v1225_v32  ;;  %v1241_v34 = vsel %vm1239_vm5, %v1235_v33, 0  ;;  %v1765_v32 = vsel %vm619_vm0, %v3219_v31, 0  ;;  %v1558_v33 = vsub.s32 5, %v3556_v22 }
 0x6cd   : > { %2999 = vmatpush3.bf16.msra.mxu1 %v1241_v34 }
 0x6ce   : > { %3004 = vmatprep.subr.bf16.mxu1 %v3355_v7 }
 0x6cf   : > { %v1333_v41 = vpop.permute.xlu0 %1332 }
 0x6d0   : > { %v1338_v43 = vsel %vm869_vm2, %v1333_v41, 0 }
 0x6d9   : > { %v3260_v35 = vpop.eup %3259 }
 0x6da   : > { %v1227_v36 = vsel %vm1126_vm3, %v3260_v35, 0.0 }
 0x6db   : > { %1228 = vadd.xlane.f32.xlu1 %v1227_v36  ;;  %v1559_v36 = vrot.slane %v3562_v24, %v1558_v33 }
 0x6ec   : > { %1284 = vrot.lane.b32.xlu1 %v1118_v4, %s3364_s29  ;;  %s2853_s29 = sshll.u32 %s3492_s1, 7 }
 0x6ed   : > { %s2626_s20 = scalar_lea.hbm %s4086_s19, %s2853_s29 }
 0x6f0   : > { %1330 = vrot.lane.b32.xlu1 %v1117_v14, %s3363_s26 }
 0x764   : > { %v1229_v37 = vpop.xlane.xlu1 %1228 }
 0x765   : > { %3261 = vrcp.f32 %v1229_v37 }
 0x768   : > { %v1285_v42 = vpop.permute.xlu1 %1284 }
 0x76c   : > { %v1331_v44 = vpop.permute.xlu1 %1330 }
 0x772   : > { %v3262_v38 = vpop.eup %3261 }
 0x773   : > { %v1231_v39 = vmul.f32 %v3262_v38, %v3260_v35 }
 0x775   : > { %v1232_v40 = vpack.c.bf16 %v1231_v39, %v1231_v39 }
 0x777   : > { %3001 = vmatmul.mubr.msk.bf16.vlgmr.msra.gmra.mxu1 %vm1126_vm3, %v1232_v40 }
 0x778   : > { %3005 = vmatpush3.bf16.xpose.msra.mxu1 %v1131_v6  ;;  %3006 = vmatprep.mubr.msk.bf16.mxu1 %vm3356_vm1, %v3355_v7  ;;  %v3217_v6 = vld [vmem:[%s4079_s12 + $0x8] sm:$0xff]  }
 0x779   : > { %3010 = vmatprep.subr.bf16.mxu1 %v3355_v7  ;;  %v1513_v16 = vsel %vm869_vm2, %v3217_v6, 0 }
 0x77f   : > { %3007 = vmatmul.mubr.msk.bf16.vlgmr.msra.gmra.mxu1 %vm1126_vm3, %v1285_v42 }
 0x780   : > { %3011 = vmatpush3.bf16.xpose.msra.mxu1 %v1338_v43  ;;  %3012 = vmatprep.mubr.msk.bf16.mxu1 %vm3356_vm1, %v3355_v7 }
 0x781   : > { %3022 = vmatprep.subr.bf16.mxu1 %v3355_v7 }
 0x787   : > { %3013 = vmatmul.mubr.msk.bf16.vlgmr.msra.gmra.mxu1 %vm869_vm2, %v1331_v44  ;;  %v3220_v44 = vld [vmem:[%s4082_s15 + $0x10] sm:$0xff]  }
 0x788   : > { %3026 = vmatprep.mubr.msk.bf16.mxu1 %vm3356_vm1, %v3355_v7 }
 0x837   : > { %v1277_v46 = vpop.f32.mrf.mxu1 }
 0x838   : > { %v1283_v18 = vpack.c.bf16 %v1277_v46, %v1277_v46  ;;  %v1762_v46 = vsel %vm619_vm0, %v3220_v44, 0 }
 0x839   : > { %v3002_v47 = vpop.f32.mrf.mxu1 }
 0x83a   : > { %v1574_v47 = vld [vmem:[%s4080_s13] sm:$0xf] }
 0x83b   : > { %v1280_v48 = vpop.f32.mrf.mxu1 }
 0x83d   : > { %v3003_v49 = vpop.f32.mrf.mxu1 }
 0x83e   : > { %v3222_v49 = vld [vmem:[%s4082_s15] sm:$0xff]  }
 0x83f   : > { %v1323_v50 = vpop.f32.mrf.mxu1 }
 0x841   : > { %v3008_v51 = vpop.f32.mrf.mxu1 }
 0x843   : > { %v1326_v52 = vpop.f32.mrf.mxu1 }
 0x845   : > { %v3009_v53 = vpop.f32.mrf.mxu1 }
 0x847   : > { %v1374_v54 = vpop.f32.mrf.mxu1 }
 0x848   : > { %v1375_v55 = vadd.f32 %v1374_v54, %v1323_v50  ;;  %v1756_v50 = vsel %vm619_vm0, %v3222_v49, 0  ;;  %v1571_v54 = vsub.s32 3, %v3556_v22 }
 0x849   : > { %v3014_v56 = vpop.f32.mrf.mxu1 }
 0x84a   : > { %v1380_v57 = vmul.f32 0.20412415, %v1375_v55  ;;  %v1572_v55 = vrot.slane %v3562_v24, %v1571_v54  ;;  %v2741_v24 = vld [vmem:[%s4083_s16] ss:$0 sm:$0xff] }
 0x84b   : > { %v1377_v58 = vpop.f32.mrf.mxu1 }
 0x84c   : > { %v1381_v59 = vsel %vm1111_vm4, %v1380_v57, -1e+30 }
 0x84d   : > { %v3015_v60 = vpop.f32.mrf.mxu1  ;;  %v1382_v61 = vsel %vm1126_vm3, %v1381_v59, -inf }
 0x84e   : > { %1383 = vmax.xlane.f32.xlu0 %v1382_v61 }
 0x864   : > { %1394 = vrot.lane.b32.xlu0 %v3680_v11, %s3365_s22  ;;  %s606_s22 = scalar_lea.vmem [#allocation2], %s2703_s25 }
 0x865   : > { %s2628_s23 = sshll.u32 %s606_s22, 4  ;;  %s2629_s23 = int_to_ptr.vmem [resolvable:$true] %s2628_s23 }
 0x868   : > { %1453 = vrot.lane.b32.xlu0 %v3218_v2, %s3363_s26 }
 0x8d7   : > { %v1384_v62 = vpop.xlane.xlu0 %1383 }
 0x8d8   : > { %v1385_v63 = vsub.f32 %v1381_v59, %v1384_v62 }
 0x8da   : > { %v1386_v0 = vmul.f32 1.442695, %v1385_v63 }
 0x8db   : > { %v1395_v1 = vpop.permute.xlu0 %1394 }
 0x8dc   : > { %3263 = vpow2.f32 %v1386_v0  ;;  %v1400_v3 = vsel %vm1239_vm5, %v1395_v1, 0 }
 0x8dd   : > { %3017 = vmatpush3.bf16.msra.mxu0 %v1400_v3  ;;  %v3223_v3 = vld [vmem:[%s4084_s17 + $0x8] sm:$0xff]  }
 0x8de   : > { %3030 = vmatprep.subr.bf16.mxu0 %v3355_v7 }
 0x8df   : > { %v1454_v11 = vpop.permute.xlu0 %1453 }
 0x8e0   : > { %v1461_v12 = vsel %vm869_vm2, %v1454_v11, 0 }
 0x8e9   : > { %v3264_v4 = vpop.eup %3263 }
 0x8ea   : > { %v1388_v5 = vsel %vm1126_vm3, %v3264_v4, 0.0 }
 0x8eb   : > { %1389 = vadd.xlane.f32.xlu1 %v1388_v5  ;;  %v3224_v5 = vld [vmem:[%s4084_s17] sm:$0xff]  }
 0x8fc   : > { %1455 = vrot.lane.b32.xlu1 %v3217_v6, %s3363_s26  ;;  %v1845_v6 = vsel %vm619_vm0, %v3224_v5, 0  ;;  %s3293_s26 = scalar_lea.vmem %s2629_s23, 128 }
 0x8fd   : > { %p3294_p11 = scmp.ne.s32.totalorder %s2629_s23, %s3293_s26 }
 0x8ff   : > { %p3295_p12 = pnand %p3294_p11, %p3509_p5 }
 0x901   : > { %p3296_p13 = pneg %p3295_p12 }
 0x974   : > { %v1390_v8 = vpop.xlane.xlu1 %1389 }
 0x975   : > { %3265 = vrcp.f32 %v1390_v8 }
 0x978   : > { %v1456_v9 = vpop.permute.xlu1 %1455 }
 0x979   : > { %v1464_v10 = vsel %vm869_vm2, %v1456_v9, 0 }
 0x97a   : > { %3023 = vmatpush3.bf16.xpose.msra.mxu1 %v1464_v10 }
 0x97b   : > { %3024 = vmatprep.subr.bf16.mxu1 %v3355_v7 }
 0x982   : > { %v3266_v13 = vpop.eup %3265  ;;  %3025 = vmatpush3.bf16.xpose.msra.mxu1 %v1461_v12  ;;  %v3225_v12 = vld [vmem:[%s4082_s15 + $0x38] sm:$0xff]  }
 0x983   : > { %v1392_v14 = vmul.f32 %v3266_v13, %v3264_v4  ;;  %3038 = vmatprep.subr.mxu1 %v3355_v7  ;;  %v1848_v4 = vsel %vm619_vm0, %v3223_v3, 0 }
 0x985   : > { %v1393_v15 = vpack.c.bf16 %v1392_v14, %v1392_v14 }
 0x987   : > { %3019 = vmatmul.mubr.msk.bf16.vlgmr.msra.gmra.mxu0 %vm1126_vm3, %v1393_v15 }
 0x988   : > { %3031 = vmatpush3.bf16.xpose.msra.mxu0 %v1513_v16  ;;  %3034 = vmatprep.mubr.msk.bf16.mxu0 %vm3356_vm1, %v3355_v7  ;;  %v1944_v16 = vsel %vm619_vm0, %v3225_v12, 0 }
 0x989   : > { %3032 = vmatprep.subr.bf16.mxu0 %v3355_v7 }
 0x990   : > { %3033 = vmatpush3.bf16.xpose.msra.mxu0 %v1510_v17  ;;  %v3226_v17 = vld [vmem:[%s4082_s15 + $0x30] sm:$0xff]  }
 0x991   : > { %3043 = vmatprep.subr.bf16.mxu0 %v3355_v7 }
 0x997   : > { %3035 = vmatmul.mubr.msk.bf16.vlgmr.msra.gmra.mxu0 %vm869_vm2, %v1283_v18  ;;  %v1941_v18 = vsel %vm619_vm0, %v3226_v17, 0 }
 0x998   : > { %3051 = vmatprep.mubr.msk.bf16.mxu0 %vm3356_vm1, %v3355_v7  ;;  %3044 = vmatpush3.bf16.xpose.msra.mxu0 %v1765_v32 }
 0x999   : > { %3045 = vmatprep.subr.bf16.mxu0 %v3355_v7 }
 0x9a0   : > { %3046 = vmatpush3.bf16.xpose.msra.mxu0 %v1762_v46 }
 0x9a1   : > { %3047 = vmatprep.subr.bf16.mxu0 %v3355_v7 }
 0xa47   : > { %v1436_v21 = vpop.f32.mrf.mxu0 }
 0xa48   : > { %v1442_v23 = vpack.c.bf16 %v1436_v21, %v1436_v21  ;;  %v3227_v21 = vld [vmem:[%s4082_s15 + $0x28] sm:$0xff]  }
 0xa49   : > { %v3020_v25 = vpop.f32.mrf.mxu0 }
 0xa4a   : > { %3027 = vmatmul.mubr.msk.bf16.vlgmr.msra.gmra.mxu1 %vm869_vm2, %v1442_v23  ;;  %v1938_v23 = vsel %vm619_vm0, %v3227_v21, 0  ;;  %v3228_v25 = vld [vmem:[%s4082_s15 + $0x20] sm:$0xff]   ;;  %v3238_v21 = vld [vmem:[%s4082_s15 + $0x70] sm:$0xff]  }
 0xa4b   : > { %v1439_v26 = vpop.f32.mrf.mxu0  ;;  %3040 = vmatprep.mubr.msk.f32.mxu1 %vm3356_vm1, %v3355_v7  ;;  %3039 = vmatpush3.xpose.msk.msra.mxu1 %vm619_vm0, %v1574_v47 }
 0xa4c   : > { %3055 = vmatprep.subr.bf16.mxu1 %v3355_v7  ;;  %v1935_v26 = vsel %vm619_vm0, %v3228_v25, 0  ;;  %v3239_v25 = vld [vmem:[%s4082_s15 + $0x68] sm:$0xff]  }
 0xa4d   : > { %v3021_v27 = vpop.f32.mrf.mxu0 }
 0xa57   : > { %v1549_v28 = vpop.f32.mrf.mxu0 }
 0xa59   : > { %v3036_v29 = vpop.f32.mrf.mxu0 }
 0xa5b   : > { %v1552_v30 = vpop.f32.mrf.mxu0 }
 0xa5d   : > { %v3037_v20 = vpop.f32.mrf.mxu0 }
 0xa5e   : > { %v2761_v20 = vld [vmem:[%s4083_s16 + $0x1] ss:$0 sm:$0xff] }
 0xb0a   : > { %v1500_v34 = vpop.f32.mrf.mxu1 }
 0xb0b   : > { %v1550_v35 = vadd.f32 %v1549_v28, %v1500_v34 }
 0xb0c   : > { %v3028_v37 = vpop.f32.mrf.mxu1 }
 0xb0d   : > { %v1555_v38 = vadd.f32 %v1550_v35, %v3575_v45  ;;  %v3221_v45 = vld [vmem:[%s4082_s15 + $0x8] sm:$0xff]  }
 0xb0e   : > { %v1503_v39 = vpop.f32.mrf.mxu1  ;;  %v1759_v48 = vsel %vm619_vm0, %v3221_v45, 0  ;;  %v3231_v45 = vld [vmem:[%s4082_s15 + $0x58] sm:$0xff]  }
 0xb0f   : > { %v3761_v40 = vadd.f32 %v1559_v36, %v1555_v38  ;;  %3048 = vmatpush3.bf16.xpose.msra.mxu0 %v1759_v48  ;;  %v3229_v36 = vld [vmem:[%s4084_s17 + $0x18] sm:$0xff]   ;;  %v3230_v38 = vld [vmem:[%s4084_s17 + $0x10] sm:$0xff]  }
 0xb10   : > { %v3029_v41 = vpop.f32.mrf.mxu1  ;;  %3049 = vmatprep.subr.bf16.mxu0 %v3355_v7  ;;  %v2029_v37 = vsel %vm619_vm0, %v3229_v36, 0  ;;  %v2026_v39 = vsel %vm619_vm0, %v3230_v38, 0 }
 0xb11   : > { %v1561_v42 = vmul.f32 %v3761_v40, %v3761_v40 }
 0xb13   : > { %v1562_v43 = vsel %vm619_vm0, %v1561_v42, 0.0 }
 0xb14   : > { %1563 = vadd.xlane.f32.xlu1 %v1562_v43 }
 0xb17   : > { %3050 = vmatpush3.bf16.xpose.msra.mxu0 %v1756_v50  ;;  %v2124_v50 = vsel %vm619_vm0, %v3231_v45, 0 }
 0xb18   : > { %3075 = vmatprep.subr.bf16.mxu0 %v3355_v7 }
 0xb9d   : > { %v1564_v51 = vpop.xlane.xlu1 %1563 }
 0xb9e   : > { %v1565_v52 = vmul.f32 0.03125, %v1564_v51  ;;  %v3232_v51 = vld [vmem:[%s4082_s15 + $0x50] sm:$0xff]  }
 0xba0   : > { %v1566_v53 = vadd.f32 1.1920929e-07, %v1565_v52  ;;  %v2121_v52 = vsel %vm619_vm0, %v3232_v51, 0 }
 0xba2   : > { %3267 = vrsqrt.f32 %v1566_v53  ;;  %v3233_v53 = vld [vmem:[%s4082_s15 + $0x48] sm:$0xff]  }
 0xba3   : > { %v2118_v54 = vsel %vm619_vm0, %v3233_v53, 0 }
 0xbaf   : > { %v3268_v56 = vpop.eup %3267 }
 0xbb0   : > { %v1568_v57 = vmul.f32 %v3268_v56, %v3761_v40 }
 0xbb2   : > { %v1573_v58 = vmul.f32 %v1572_v55, %v1568_v57  ;;  %v3234_v55 = vld [vmem:[%s4082_s15 + $0x40] sm:$0xff]  }
 0xbb3   : > { %v2115_v56 = vsel %vm619_vm0, %v3234_v55, 0 }
 0xbb4   : > { %3041 = vmatmul.mubr.msk.f32.vlgmr.msra.gmra.mxu1 %vm619_vm0, %v1573_v58  ;;  %v3790_v59 = vpack.c.bf16 %v1573_v58, %v1573_v58 }
 0xbb5   : > { %3059 = vmatprep.mubr.msk.bf16.mxu1 %vm3356_vm1, %v3355_v7  ;;  %3056 = vmatpush3.bf16.xpose.msra.mxu1 %v1848_v4  ;;  %v3235_v4 = vld [vmem:[%s4084_s17 + $0x28] sm:$0xff]  }
 0xbb6   : > { %3052 = vmatmul.mubr.msk.bf16.vlgmr.msra.gmra.mxu0 %vm619_vm0, %v3790_v59  ;;  %3057 = vmatprep.subr.bf16.mxu1 %v3355_v7  ;;  %v2209_v5 = vsel %vm619_vm0, %v3235_v4, 0 }
 0xbb7   : > { %3079 = vmatprep.mubr.msk.bf16.mxu0 %vm3356_vm1, %v3355_v7  ;;  %3076 = vmatpush3.bf16.xpose.msra.mxu0 %v2029_v37 }
 0xbb8   : > { %3077 = vmatprep.subr.bf16.mxu0 %v3355_v7 }
 0xbbd   : > { %3058 = vmatpush3.bf16.xpose.msra.mxu1 %v1845_v6  ;;  %v3236_v6 = vld [vmem:[%s4084_s17 + $0x20] sm:$0xff]  }
 0xbbe   : > { %3063 = vmatprep.subr.bf16.mxu1 %v3355_v7 }
 0xbbf   : > { %3078 = vmatpush3.bf16.xpose.msra.mxu0 %v2026_v39 }
 0xbc0   : > { %3083 = vmatprep.subr.bf16.mxu0 %v3355_v7 }
 0xc74   : > { %v3798_v22 = vpop.f32.mrf.mxu1 }
 0xc76   : > { %v3042_v60 = vpop.f32.mrf.mxu1  ;;  %v1801_v61 = vpop.f32.mrf.mxu0 }
 0xc77   : > { %v1802_v62 = vadd.f32 %v2741_v24, %v1801_v61  ;;  %v2786_v61 = vld [vmem:[%s4083_s16 + $0x2] ss:$0 sm:$0xff] }
 0xc78   : > { %v3053_v63 = vpop.f32.mrf.mxu0 }
 0xc79   : > { %1808 = vrot.lane.b32.xlu0 %v1802_v62, %s3357_s28 }
 0xc7a   : > { %v1804_v0 = vpop.f32.mrf.mxu0 }
 0xc7c   : > { %v3054_v1 = vpop.f32.mrf.mxu0 }
 0xceb   : > { %v1809_v2 = vpop.permute.xlu0 %1808 }
 0xcec   : > { %v1811_v8 = vmul.f32 %v1809_v2, %v1802_v62  ;;  %v2206_v2 = vsel %vm619_vm0, %v3236_v6, 0 }
 0xcee   : > { %v2747_v9 = vmul.f32 -1.442695, %v1811_v8 }
 0xcf0   : > { %3269 = vpow2.f32 %v2747_v9 }
 0xcfd   : > { %v3270_v10 = vpop.eup %3269 }
 0xcfe   : > { %v1815_v11 = vadd.f32 1.0, %v3270_v10 }
 0xd00   : > { %3271 = vrcp.f32 %v1815_v11 }
 0xd0d   : > { %v3272_v13 = vpop.eup %3271 }
 0xd0e   : > { %v1818_v14 = vmul.f32 %v3272_v13, %v1811_v8  ;;  %v1652_v8 = vsel %vm1651_vm6, %v3798_v22, -inf }
 0xd10   : > { %v1819_v15 = vpack.c.bf16 %v1818_v14, %v1818_v14  ;;  %v3237_v14 = vld [vmem:[%s4082_s15 + $0x78] sm:$0xff]  }
 0xd12   : > { %3060 = vmatmul.mubr.msk.bf16.vlgmr.msra.gmra.mxu1 %vm619_vm0, %v1819_v15 }
 0xd13   : > { %3064 = vmatpush3.bf16.xpose.msra.mxu1 %v1944_v16  ;;  %3071 = vmatprep.mubr.msk.bf16.mxu1 %vm3356_vm1, %v3355_v7 }
 0xd14   : > { %3065 = vmatprep.subr.bf16.mxu1 %v3355_v7 }
 0xd1b   : > { %3066 = vmatpush3.bf16.xpose.msra.mxu1 %v1941_v18  ;;  %v2304_v18 = vsel %vm619_vm0, %v3237_v14, 0 }
 0xd1c   : > { %3067 = vmatprep.subr.bf16.mxu1 %v3355_v7 }
 0xd23   : > { %3068 = vmatpush3.bf16.xpose.msra.mxu1 %v1938_v23  ;;  %v2301_v23 = vsel %vm619_vm0, %v3238_v21, 0 }
 0xd24   : > { %3069 = vmatprep.subr.bf16.mxu1 %v3355_v7 }
 0xd2b   : > { %3070 = vmatpush3.bf16.xpose.msra.mxu1 %v1935_v26  ;;  %v2298_v26 = vsel %vm619_vm0, %v3239_v25, 0 }
 0xd2c   : > { %3095 = vmatprep.subr.bf16.mxu1 %v3355_v7 }
 0xd32   : > { %3072 = vmatmul.mubr.msk.bf16.vlgmr.msra.gmra.mxu1 %vm619_vm0, %v3790_v59 }
 0xd33   : > { %3099 = vmatprep.mubr.msk.bf16.mxu1 %vm3356_vm1, %v3355_v7  ;;  %3096 = vmatpush3.bf16.xpose.msra.mxu1 %v2209_v5 }
 0xd34   : > { %3097 = vmatprep.subr.bf16.mxu1 %v3355_v7 }
 0xd3b   : > { %3098 = vmatpush3.bf16.xpose.msra.mxu1 %v2206_v2  ;;  %v3244_v2 = vld [vmem:[%s4082_s15 + $0x90] sm:$0xff]  }
 0xd3c   : > { %3103 = vmatprep.subr.bf16.mxu1 %v3355_v7 }
 0xdd2   : > { %v3841_v27 = vpop.f32.mrf.mxu1 }
 0xdd4   : > { %v3061_v28 = vpop.f32.mrf.mxu1 }
 0xdd6   : > { %v1887_v29 = vpop.f32.mrf.mxu1 }
 0xdd8   : > { %v3062_v30 = vpop.f32.mrf.mxu1 }
 0xdf2   : > { %v1980_v31 = vpop.f32.mrf.mxu1 }
 0xdf3   : > { %v1981_v32 = vadd.f32 %v2761_v20, %v1980_v31  ;;  %v3240_v20 = vld [vmem:[%s4082_s15 + $0x60] sm:$0xff]  }
 0xdf4   : > { %v3073_v33 = vpop.f32.mrf.mxu1  ;;  %v2295_v31 = vsel %vm619_vm0, %v3240_v20, 0 }
 0xdf5   : > { %1987 = vrot.lane.b32.xlu0 %v1981_v32, %s3357_s28 }
 0xdf6   : > { %v1983_v34 = vpop.f32.mrf.mxu1 }
 0xdf8   : > { %v3074_v35 = vpop.f32.mrf.mxu1 }
 0xdf9   : > { %v2740_v35 = vld [vmem:[%s4081_s14] ss:$0 sm:$0xff] }
 0xe67   : > { %v1988_v41 = vpop.permute.xlu0 %1987 }
 0xe68   : > { %v1990_v42 = vmul.f32 %v1988_v41, %v1981_v32 }
 0xe6a   : > { %v2767_v43 = vmul.f32 -1.442695, %v1990_v42 }
 0xe6c   : > { %3273 = vpow2.f32 %v2767_v43 }
 0xe79   : > { %v3274_v44 = vpop.eup %3273 }
 0xe7a   : > { %v1994_v46 = vadd.f32 1.0, %v3274_v44  ;;  %v2811_v44 = vld [vmem:[%s4083_s16 + $0x3] ss:$0 sm:$0xff] }
 0xe7c   : > { %3275 = vrcp.f32 %v1994_v46 }
 0xe89   : > { %v3276_v47 = vpop.eup %3275 }
 0xe8a   : > { %v1997_v48 = vmul.f32 %v3276_v47, %v1990_v42 }
 0xe8c   : > { %v1998_v49 = vpack.c.bf16 %v1997_v48, %v1997_v48 }
 0xe8e   : > { %3080 = vmatmul.mubr.msk.bf16.vlgmr.msra.gmra.mxu0 %vm619_vm0, %v1998_v49 }
 0xe8f   : > { %3084 = vmatpush3.bf16.xpose.msra.mxu0 %v2124_v50  ;;  %3091 = vmatprep.mubr.msk.bf16.mxu0 %vm3356_vm1, %v3355_v7  ;;  %v3241_v50 = vld [vmem:[%s4084_s17 + $0x38] sm:$0xff]  }
 0xe90   : > { %3085 = vmatprep.subr.bf16.mxu0 %v3355_v7  ;;  %v2389_v51 = vsel %vm619_vm0, %v3241_v50, 0 }
 0xe97   : > { %3086 = vmatpush3.bf16.xpose.msra.mxu0 %v2121_v52  ;;  %v3242_v52 = vld [vmem:[%s4084_s17 + $0x30] sm:$0xff]  }
 0xe98   : > { %3087 = vmatprep.subr.bf16.mxu0 %v3355_v7  ;;  %v2386_v53 = vsel %vm619_vm0, %v3242_v52, 0 }
 0xe9f   : > { %3088 = vmatpush3.bf16.xpose.msra.mxu0 %v2118_v54 }
 0xea0   : > { %3089 = vmatprep.subr.bf16.mxu0 %v3355_v7 }
 0xea7   : > { %3090 = vmatpush3.bf16.xpose.msra.mxu0 %v2115_v56 }
 0xea8   : > { %3115 = vmatprep.subr.bf16.mxu0 %v3355_v7 }
 0xeae   : > { %3092 = vmatmul.mubr.msk.bf16.vlgmr.msra.gmra.mxu0 %vm619_vm0, %v3790_v59 }
 0xeaf   : > { %3119 = vmatprep.mubr.msk.bf16.mxu0 %vm3356_vm1, %v3355_v7  ;;  %3116 = vmatpush3.bf16.xpose.msra.mxu0 %v2389_v51 }
 0xeb0   : > { %3117 = vmatprep.subr.bf16.mxu0 %v3355_v7 }
 0xeb7   : > { %3118 = vmatpush3.bf16.xpose.msra.mxu0 %v2386_v53 }
 0xeb8   : > { %3123 = vmatprep.subr.bf16.mxu0 %v3355_v7 }
 0xf4e   : > { %v3884_v57 = vpop.f32.mrf.mxu0 }
 0xf50   : > { %v3081_v58 = vpop.f32.mrf.mxu0 }
 0xf52   : > { %v2068_v24 = vpop.f32.mrf.mxu0 }
 0xf54   : > { %v3082_v60 = vpop.f32.mrf.mxu0 }
 0xf6e   : > { %v2160_v62 = vpop.f32.mrf.mxu0 }
 0xf6f   : > { %v2161_v63 = vadd.f32 %v2786_v61, %v2160_v62 }
 0xf70   : > { %v3093_v0 = vpop.f32.mrf.mxu0 }
 0xf71   : > { %2167 = vrot.lane.b32.xlu0 %v2161_v63, %s3357_s28 }
 0xf72   : > { %v2163_v1 = vpop.f32.mrf.mxu0 }
 0xf73   : > { %v3243_v1 = vld [vmem:[%s4082_s15 + $0x98] sm:$0xff]  }
 0xf74   : > { %v3094_v3 = vpop.f32.mrf.mxu0  ;;  %v2484_v6 = vsel %vm619_vm0, %v3243_v1, 0 }
 0xf90   : > { %1653 = vmax.xlane.f32.xlu0 %v1652_v8  ;;  %v2481_v8 = vsel %vm619_vm0, %v3244_v2, 0 }
 0xfe3   : > { %v2168_v9 = vpop.permute.xlu0 %2167 }
 0xfe4   : > { %v2170_v10 = vmul.f32 %v2168_v9, %v2161_v63  ;;  %v3245_v9 = vld [vmem:[%s4082_s15 + $0x88] sm:$0xff]  }
 0xfe6   : > { %v2792_v11 = vmul.f32 -1.442695, %v2170_v10 }
 0xfe8   : > { %3277 = vpow2.f32 %v2792_v11  ;;  %v3246_v11 = vld [vmem:[%s4082_s15 + $0x80] sm:$0xff]  }
 0xff5   : > { %v3278_v12 = vpop.eup %3277 }
 0xff6   : > { %v2174_v13 = vadd.f32 1.0, %v3278_v12  ;;  %v2475_v12 = vsel %vm619_vm0, %v3246_v11, 0  ;;  %v3369_v11 = vmov 3  }
 0xff8   : > { %3279 = vrcp.f32 %v2174_v13 }
0x1005   : > { %v3280_v15 = vpop.eup %3279 }
0x1006   : > { %v2177_v16 = vmul.f32 %v3280_v15, %v2170_v10  ;;  %v2478_v10 = vsel %vm619_vm0, %v3245_v9, 0 }
0x1008   : > { %v2178_v17 = vpack.c.bf16 %v2177_v16, %v2177_v16 }
0x100a   : > { %3100 = vmatmul.mubr.msk.bf16.vlgmr.msra.gmra.mxu1 %vm619_vm0, %v2178_v17 }
0x100b   : > { %3104 = vmatpush3.bf16.xpose.msra.mxu1 %v2304_v18  ;;  %3111 = vmatprep.mubr.msk.bf16.mxu1 %vm3356_vm1, %v3355_v7 }
0x100c   : > { %3105 = vmatprep.subr.bf16.mxu1 %v3355_v7 }
0x1013   : > { %3106 = vmatpush3.bf16.xpose.msra.mxu1 %v2301_v23 }
0x1014   : > { %3107 = vmatprep.subr.bf16.mxu1 %v3355_v7 }
0x1019   : > { %v1654_v28 = vpop.xlane.xlu0 %1653 }
0x101a   : > { %v1655_v29 = vsub.f32 %v3798_v22, %v1654_v28 }
0x101b   : > { %3108 = vmatpush3.bf16.xpose.msra.mxu1 %v2298_v26 }
0x101c   : > { %v1656_v30 = vmul.f32 1.442695, %v1655_v29  ;;  %3109 = vmatprep.subr.bf16.mxu1 %v3355_v7 }
0x101e   : > { %3281 = vpow2.f32 %v1656_v30 }
0x1023   : > { %3110 = vmatpush3.bf16.xpose.msra.mxu1 %v2295_v31 }
0x1024   : > { %3135 = vmatprep.subr.bf16.mxu1 %v3355_v7 }
0x102a   : > { %3112 = vmatmul.mubr.msk.bf16.vlgmr.msra.gmra.mxu1 %vm619_vm0, %v3790_v59 }
0x102b   : > { %v3282_v32 = vpop.eup %3281  ;;  %3139 = vmatprep.mubr.msk.bf16.mxu1 %vm3356_vm1, %v3355_v7 }
0x102c   : > { %v1658_v22 = vsel %vm1651_vm6, %v3282_v32, 0.0 }
0x102d   : > { %1659 = vadd.xlane.f32.xlu0 %v1658_v22 }
0x10b6   : > { %v1660_v33 = vpop.xlane.xlu0 %1659 }
0x10b7   : > { %3283 = vrcp.f32 %v1660_v33 }
0x10c4   : > { %v3284_v34 = vpop.eup %3283 }
0x10c5   : > { %v3934_v36 = vmul.f32 %v3284_v34, %v3282_v32  ;;  %v2836_v34 = vld [vmem:[%s4083_s16 + $0x4] ss:$0 sm:$0xff] }
0x10c7   : > { %v3937_v37 = vadd.f32 %v2740_v35, %v3934_v36 }
0x10c9   : > { %v1671_v38 = vsel %vm1651_vm6, %v3937_v37, -inf }
0x10ca   : > { %v3941_v39 = vpop.f32.mrf.mxu1  ;;  %1672 = vmax.xlane.f32.xlu0 %v1671_v38  ;;  %v3247_v38 = vld [vmem:[%s4084_s17 + $0x48] sm:$0xff]  }
0x10cc   : > { %v3101_v41 = vpop.f32.mrf.mxu1 }
0x10cd   : > { %v2569_v41 = vsel %vm619_vm0, %v3247_v38, 0 }
0x10ce   : > { %v2248_v42 = vpop.f32.mrf.mxu1  ;;  %3136 = vmatpush3.bf16.xpose.msra.mxu1 %v2569_v41 }
0x10cf   : > { %3137 = vmatprep.subr.bf16.mxu1 %v3355_v7 }
0x10d0   : > { %v3102_v43 = vpop.f32.mrf.mxu1 }
0x10ea   : > { %v2340_v46 = vpop.f32.mrf.mxu1 }
0x10eb   : > { %v2341_v45 = vadd.f32 %v2811_v44, %v2340_v46 }
0x10ec   : > { %v3113_v47 = vpop.f32.mrf.mxu1 }
0x10ed   : > { %2347 = vrot.lane.b32.xlu1 %v2341_v45, %s3357_s28 }
0x10ee   : > { %v2343_v48 = vpop.f32.mrf.mxu1 }
0x10f0   : > { %v3114_v49 = vpop.f32.mrf.mxu1 }
0x1153   : > { %v1673_v54 = vpop.xlane.xlu0 %1672 }
0x1154   : > { %vm1674_vm7 = vcmp.ge.f32.partialorder %v3937_v37, %v1673_v54 }
0x1155   : > { %v1675_v55 = vsel %vm1674_vm7, %v3692_v19, 4 }
0x1156   : > { %v1676_v56 = vsel %vm1651_vm6, %v1675_v55, 2147483647 }
0x1157   : > { %v1678_v58 = vshra.s32 %v1676_v56, 16  ;;  %v1677_v13 = vand.u32 65535, %v1676_v56 }
0x1159   : > { %v1680_v24 = vcvt.s32.f32 %v1678_v58  ;;  %v1679_v15 = vcvt.s32.f32 %v1677_v13  ;;  %v2748_v13 = vld [vmem:[%s4085_s18] ss:$0 sm:$0xff] }
0x115b   : > { %1681 = vmin.xlane.f32.xlu0 %v1680_v24 }
0x115f   : > { %v2348_v60 = vpop.permute.xlu1 %2347 }
0x1160   : > { %v2350_v61 = vmul.f32 %v2348_v60, %v2341_v45  ;;  %v3366_v60 = vmov 2  }
0x1161   : > { %3199 = vset.pattern.permute.xlu0 %v3366_v60 }
0x1162   : > { %v2817_v62 = vmul.f32 -1.442695, %v2350_v61 }
0x1164   : > { %3285 = vpow2.f32 %v2817_v62 }
0x1171   : > { %v3286_v63 = vpop.eup %3285 }
0x1172   : > { %v2354_v0 = vadd.f32 1.0, %v3286_v63 }
0x1174   : > { %3287 = vrcp.f32 %v2354_v0 }
0x1181   : > { %v3288_v3 = vpop.eup %3287 }
0x1182   : > { %v2357_v4 = vmul.f32 %v3288_v3, %v2350_v61  ;;  %v3367_v61 = vmov 0  }
0x1183   : > { %3197 = vset.pattern.permute.xlu1 %v3367_v61 }
0x1184   : > { %v2358_v5 = vpack.c.bf16 %v2357_v4, %v2357_v4 }
0x1186   : > { %3120 = vmatmul.mubr.msk.bf16.vlgmr.msra.gmra.mxu0 %vm619_vm0, %v2358_v5 }
0x1187   : > { %3124 = vmatpush3.bf16.xpose.msra.mxu0 %v2484_v6  ;;  %3131 = vmatprep.mubr.msk.bf16.mxu0 %vm3356_vm1, %v3355_v7 }
0x1188   : > { %3125 = vmatprep.subr.bf16.mxu0 %v3355_v7 }
0x118f   : > { %3126 = vmatpush3.bf16.xpose.msra.mxu0 %v2481_v8 }
0x1190   : > { %3127 = vmatprep.subr.bf16.mxu0 %v3355_v7 }
0x1197   : > { %3128 = vmatpush3.bf16.xpose.msra.mxu0 %v2478_v10  ;;  %v3368_v10 = vmov 1  }
0x1198   : > { %3129 = vmatprep.subr.bf16.mxu0 %v3355_v7 }
0x119f   : > { %3130 = vmatpush3.bf16.xpose.msra.mxu0 %v2475_v12 }
0x11a6   : > { %3132 = vmatmul.mubr.msk.bf16.vlgmr.msra.gmra.mxu0 %vm619_vm0, %v3790_v59 }
0x11e4   : > { %v1682_v14 = vpop.xlane.xlu0 %1681 }
0x11e5   : > { %vm1683_vm8 = vcmp.eq.f32.partialorder %v1680_v24, %v1682_v14  ;;  %v1688_v30 = vcvt.f32.s32 %v1682_v14  ;;  %v1885_v14 = vadd.f32 %v2748_v13, %v3841_v27  ;;  %v2848_v27 = vld [vmem:[%s4085_s18 + $0x4] ss:$0 sm:$0xff] }
0x11e6   : > { %v1684_v16 = vsel %vm1683_vm8, %v1679_v15, inf }
0x11e7   : > { %1685 = vmin.xlane.f32.xlu1 %v1684_v16  ;;  %v1689_v31 = vshll.u32 %v1688_v30, 16 }
0x1246   : > { %v3984_v17 = vpop.f32.mrf.mxu0 }
0x1248   : > { %v3121_v18 = vpop.f32.mrf.mxu0 }
0x124a   : > { %v2428_v21 = vpop.f32.mrf.mxu0 }
0x124c   : > { %v3122_v23 = vpop.f32.mrf.mxu0 }
0x124d   : > { %v2823_v23 = vld [vmem:[%s4085_s18 + $0x3] ss:$0 sm:$0xff] }
0x124e   : > { %v2426_v30 = vadd.f32 %v2823_v23, %v3984_v17 }
0x1266   : > { %v2520_v25 = vpop.f32.mrf.mxu0 }
0x1267   : > { %v2521_v35 = vadd.f32 %v2836_v34, %v2520_v25 }
0x1268   : > { %v3133_v26 = vpop.f32.mrf.mxu0 }
0x126a   : > { %v2523_v28 = vpop.f32.mrf.mxu0 }
0x126c   : > { %v3134_v29 = vpop.f32.mrf.mxu0 }
0x1270   : > { %v1686_v20 = vpop.xlane.xlu1 %1685 }
0x1271   : > { %v1687_v32 = vcvt.f32.s32 %v1686_v20 }
0x1273   : > { %v1690_v59 = vadd.s32 %v1689_v31, %v1687_v32 }
0x1275   : > { %vm1691_vm9 = vcmp.eq.s32.totalorder %v3692_v19, %v1690_v59 }
0x1276   : > { %v1693_v22 = vsel %vm1691_vm9, -inf, %v3937_v37  ;;  %v3248_v37 = vld [vmem:[%s4084_s17 + $0x40] sm:$0xff]   ;;  %v1692_v8 = vsel %vm1691_vm9, %v3934_v36, 0.0 }
0x1277   : > { %v1694_v33 = vsel %vm1651_vm6, %v1693_v22, -inf  ;;  %v2566_v42 = vsel %vm619_vm0, %v3248_v37, 0 }
0x1278   : > { %1695 = vmax.xlane.f32.xlu0 %v1694_v33  ;;  %3138 = vmatpush3.bf16.xpose.msra.mxu1 %v2566_v42 }
0x128e   : > { %2527 = vrot.lane.b32.xlu0 %v2521_v35, %s3357_s28  ;;  %s3370_s28 = smov [#allocation2]  }
0x128f   : > { %s3297_s1 = sshll.u32 %s3370_s28, 4  ;;  %s3298_s1 = int_to_ptr.vmem [resolvable:$false] %s3297_s1 }
0x1290   : > { %s3299_s25 = scalar_lea.vmem %s3298_s1, 256  ;;  %p3300_p0 = scmp.lt.s32.totalorder %s2629_s23, %s3298_s1 }
0x1291   : > { %p3301_p1 = scmp.lt.s32.totalorder %s3299_s25, %s3293_s26 }
0x1293   : > { %p3302_p2 = por %p3301_p1, %p3300_p0 }
0x1295   : > { %p3303_p3 = pnand %p3302_p2, %p3296_p13 }
0x1301   : > { %v1696_v43 = vpop.xlane.xlu0 %1695 }
0x1302   : > { %vm1697_vm10 = vcmp.ge.f32.partialorder %v1693_v22, %v1696_v43 }
0x1303   : > { %v1698_v44 = vsel %vm1697_vm10, %v3692_v19, 4 }
0x1304   : > { %v1699_v46 = vsel %vm1651_vm6, %v1698_v44, 2147483647 }
0x1305   : > { %v2528_v45 = vpop.permute.xlu0 %2527  ;;  %v1701_v47 = vshra.s32 %v1699_v46, 16  ;;  %v1700_v55 = vand.u32 65535, %v1699_v46 }
0x1306   : > { %v2530_v48 = vmul.f32 %v2528_v45, %v2521_v35 }
0x1307   : > { %v1703_v49 = vcvt.s32.f32 %v1701_v47  ;;  %v1702_v58 = vcvt.s32.f32 %v1700_v55 }
0x1308   : > { %v2842_v50 = vmul.f32 -1.442695, %v2530_v48 }
0x1309   : > { %1704 = vmin.xlane.f32.xlu0 %v1703_v49 }
0x130a   : > { %3289 = vpow2.f32 %v2842_v50 }
0x1317   : > { %v3290_v7 = vpop.eup %3289 }
0x1318   : > { %v2534_v51 = vadd.f32 1.0, %v3290_v7 }
0x131a   : > { %3291 = vrcp.f32 %v2534_v51 }
0x1327   : > { %v3292_v52 = vpop.eup %3291 }
0x1328   : > { %v2537_v53 = vmul.f32 %v3292_v52, %v2530_v48 }
0x132a   : > { %v2538_v54 = vpack.c.bf16 %v2537_v53, %v2537_v53 }
0x132c   : > { %3140 = vmatmul.mubr.msk.bf16.vlgmr.msra.gmra.mxu1 %vm619_vm0, %v2538_v54 }
0x1392   : > { %v1705_v56 = vpop.xlane.xlu0 %1704 }
0x1393   : > { %vm1706_vm11 = vcmp.eq.f32.partialorder %v1703_v49, %v1705_v56  ;;  %v1711_v3 = vcvt.f32.s32 %v1705_v56 }
0x1394   : > { %v1707_v24 = vsel %vm1706_vm11, %v1702_v58, inf }
0x1395   : > { %1708 = vmin.xlane.f32.xlu1 %v1707_v24  ;;  %v1712_v5 = vshll.u32 %v1711_v3, 16 }
0x13ec   : > { %v2605_v62 = vpop.f32.mrf.mxu1 }
0x13ee   : > { %v3141_v63 = vpop.f32.mrf.mxu1 }
0x13f0   : > { %v2608_v0 = vpop.f32.mrf.mxu1 }
0x13f2   : > { %v3142_v1 = vpop.f32.mrf.mxu1 }
0x141e   : > { %v1709_v4 = vpop.xlane.xlu1 %1708 }
0x141f   : > { %v1710_v6 = vcvt.f32.s32 %v1709_v4 }
0x1421   : > { %v1713_v2 = vadd.s32 %v1712_v5, %v1710_v6 }
0x1423   : > { %vm1714_vm12 = vcmp.eq.s32.totalorder %v3692_v19, %v1713_v2  ;;  %v2773_v19 = vld [vmem:[%s4085_s18 + $0x1] ss:$0 sm:$0xff] }
0x1424   : > { %v1715_v9 = vsel %vm1714_vm12, %v3934_v36, %v1692_v8  ;;  %v2798_v36 = vld [vmem:[%s4085_s18 + $0x2] ss:$0 sm:$0xff]  ;;  %v2066_v15 = vadd.f32 %v2773_v19, %v3884_v57 }
0x1425   : > { %2252 = vperm.xlu0 %3199, %v1715_v9   ;;  %1892 = vperm.xlu1 %3197, %v1715_v9   ;;  %v2246_v21 = vadd.f32 %v2798_v36, %v3941_v39  ;;  %v2606_v39 = vadd.f32 %v2848_v27, %v2605_v62 }
0x1429   : > { %3198 = vset.pattern.permute.xlu1 %v3368_v10  ;;  %3201 = vset.pattern.permute.xlu0 %v3369_v11 }
0x142a   : > { %2072 = vperm.xlu1 %3198, %v1715_v9  }
0x142e   : > { %3200 = vset.pattern.permute.xlu1 %v3369_v11 }
0x142f   : > { %2432 = vperm.xlu1 %3200, %v1715_v9  }
0x14a0   : > { %v1893_v12 = vpop.permute.xlu1 %1892  ;;  %v2253_v16 = vpop.permute.xlu0 %2252 }
0x14a1   : > { %v1895_v25 = vmul.f32 %v1893_v12, %v1885_v14  ;;  %v2255_v28 = vmul.f32 %v2253_v16, %v2246_v21 }
0x14a5   : > { %v2073_v18 = vpop.permute.xlu1 %2072 }
0x14a6   : > { %v2075_v26 = vmul.f32 %v2073_v18, %v2066_v15 }
0x14a8   : > { %v2076_v29 = vadd.f32 %v2075_v26, %v1895_v25 }
0x14aa   : > { %v2256_v57 = vadd.f32 %v2255_v28, %v2076_v29  ;;  %v2433_v20 = vpop.permute.xlu1 %2432 }
0x14ab   : > { %v2435_v31 = vmul.f32 %v2433_v20, %v2426_v30 }
0x14ad   : > { %v2436_v32 = vadd.f32 %v2435_v31, %v2256_v57 }
0x14af   : > { %v2611_v59 = vadd.f32 %v2606_v39, %v2436_v32 }
0x14b1   : > { %v2612_v22 = vadd.f32 %v2611_v59, %v3761_v40 }
0x14b3   : > { %2613 = vst.msk [vmem:[%s606_s22] sm:$0xff] %vm619_vm0, %v2612_v22 }
0x14b4   : > { %3306 = shalt.err (!%p3303_p3)
}
0x14b5   : > { %s3307_s24 = scalar_lea.hbm %s2626_s20, 128  ;;  %s3311_s22 = scalar_lea.hbm %s4086_s19, 256 }
0x14b6   : > { %p3308_p4 = scmp.ne.s32.totalorder %s2626_s20, %s3307_s24  ;;  %p3312_p9 = scmp.lt.s32.totalorder %s2626_s20, %s4086_s19 }
0x14b7   : > { %p3313_p10 = scmp.lt.s32.totalorder %s3311_s22, %s3307_s24 }
0x14b8   : > { %p3309_p7 = pnand %p3308_p4, %p3509_p5 }
0x14b9   : > { %p3314_p11 = por %p3313_p10, %p3312_p9 }
0x14ba   : > { %p3310_p8 = pneg %p3309_p7 }
0x14bc   : > { %p3315_p12 = pnand %p3314_p11, %p3310_p8 }
0x14be   : > { %3318 = shalt.err (!%p3315_p12)
}
0x14bf   : > { %3143 = dma.vmem_to_hbm [thread:$0]  (%p3509_p5), %s2629_s23, 128, %s2626_s20, %s2615_s2  }
0x14c0 PF: > { %s4109_s26 = sld [smem:[#allocation5_spill]]  ;;  %p3149_p13 = scmp.ge.s32.totalorder %s3353_s21, 2 }
0x14c2   : > { %p3146_p0 = pnand %p3149_p13, %p3513_p6 }
0x14c4   : > { %p3147_p1 = pneg %p3146_p0 }
0x14c6   : > { %s2640_s1 = sand.u32 1, %s4109_s26  }
0x14c7   : > { %s2641_s25 = scalar_lea.sflag [#allocation3], %s2640_s1 }
0x14c8   : > { %3336 = dma.done.wait (%p3147_p1), %s2641_s25, 128  }
0x14c9   : > { %3338 = vsyncadd (%p3147_p1), %s2641_s25, 4294967168  ;;  %s4111_s21 = sld [smem:[#allocation7_spill]]  ;;  %s4114_s0 = smov %s3345_s30 }
0x14ca   : > { %s4112_s4 = sld [smem:[#allocation6_spill]] }
0x14cb   : > { %s4113_s20 = sld [smem:[#allocation8_spill]] }
0x14cf   : > { %p29_p2 = scmp.ge.s32.totalorder %s4111_s21, 4  }
0x14d0   : > { %s4115_s30 = smov %s4112_s4 }
0x14d1   :  { %31 = sbr.rel (!%p29_p2) target bundleno = 9 (0x9), region = 150 }
0x14d6   :  { %2646 = vsyncpa [#allocation3], 1 }
0x14d7   :  { %2648 = vsyncpa [#allocation3 + $0x1], 1 }

</bundles_post_ra>
